<compile_context>
chip_gen: v6e
topology: v6e:2x2x1
jax: 0.10.0
libtpu: 0.0.40
codegen_flags: <defaults>
</compile_context>

<pallas_src>
import math

import jax
import jax.numpy as jnp
from jax import lax
from jax.experimental import pallas as pl
from jax.experimental.pallas import tpu as pltpu

# ---- problem sizes (small, consistent with the module) ----
B = 2           # batch
F = 32          # feature_dim
HEADS = 4       # n_heads
DIM = F // HEADS
N = 128         # sequence length
BN = B * N
F2 = 2 * F
BN_EPS = 1e-5


# ----------------------------- fused kernel ---------------------------------
def _fused_kernel(x_ref, wqkv_ref, bqkv_ref, wm_ref, bm_ref,
                  w1x_ref, w1m_ref, b1_ref, g_ref, beta_ref,
                  w2_ref, b2_ref, o_ref, qkv_sc, att_sc):
    # --- Stage 1: fused q/k/v projection into VMEM scratch ------------------
    # 1/sqrt(dim) and the projection biases are already folded in the wrapper;
    # bqkv_ref is pre-broadcast to (3F, B*N) so this is an aligned vadd.
    qkv_sc[...] = (jnp.dot(wqkv_ref[...], x_ref[...],
                           preferred_element_type=jnp.float32)
                   + bqkv_ref[...])

    # --- Stage 2: per-(head, batch) attention --------------------------------
    # Batch: static Python loop (lane offsets static, 128-aligned).
    # Heads: lax.fori_loop -> bounds vreg live ranges to one head at a time.
    for b in range(B):
        c0 = b * N                                   # static, multiple of 128

        def head_body(h, carry, c0=c0):
            r0 = pl.multiple_of(h * DIM, DIM)        # 8-aligned sublane offset
            qh = qkv_sc[pl.ds(r0, DIM), pl.ds(c0, N)]            # (DIM, N)
            kh = qkv_sc[pl.ds(F + r0, DIM), pl.ds(c0, N)]        # (DIM, N)
            vh = qkv_sc[pl.ds(2 * F + r0, DIM), pl.ds(c0, N)]    # (DIM, N)

            # transposed scores: s_t[m, n] = sum_d k[d, m] * q[d, n]
            # (only the (8,128) k tile is transposed; result feeds v @ p
            #  directly with no 128x128 relayout)
            s_t = lax.dot_general(kh, qh, (((0,), (0,)), ((), ())),
                                  preferred_element_type=jnp.float32)  # (N, N)
            # softmax over keys m == sublane axis -> VPU-friendly reductions
            s_t = s_t - jnp.max(s_t, axis=0, keepdims=True)
            p = jnp.exp(s_t)
            denom = jnp.sum(p, axis=0, keepdims=True)                  # (1, N)

            # unnormalised att[d, n] = sum_m v[d, m] * p[m, n]  (native matmul)
            att_u = lax.dot_general(vh, p, (((1,), (0,)), ((), ())),
                                    preferred_element_type=jnp.float32)  # (DIM, N)
            # deferred normalisation: scale the (8,128) tile, not the (128,128) p
            att_sc[pl.ds(r0, DIM), pl.ds(c0, N)] = (
                att_u * pl.reciprocal(denom, approx=True))
            return carry

        lax.fori_loop(0, HEADS, head_body, 0)

    # --- Stage 3: merge + MLP -------------------------------------------------
    msg = (jnp.dot(wm_ref[...], att_sc[...], preferred_element_type=jnp.float32)
           + bm_ref[...])                                          # (F, B*N)

    # mlp conv1 without building concat([x, msg]): W1 split column-wise
    h1 = (jnp.dot(w1x_ref[...], x_ref[...], preferred_element_type=jnp.float32)
          + jnp.dot(w1m_ref[...], msg, preferred_element_type=jnp.float32)
          + b1_ref[...])                                           # (2F, B*N)

    # BatchNorm1d (batch statistics) with fused affine: y = max(h1*a + b, 0)
    mean = jnp.mean(h1, axis=1, keepdims=True)                     # (2F, 1)
    var = jnp.mean((h1 - mean) ** 2, axis=1, keepdims=True)        # biased var
    a = g_ref[...] * lax.rsqrt(var + BN_EPS)                       # (2F, 1)
    bshift = beta_ref[...] - mean * a                              # (2F, 1)
    y = jnp.maximum(h1 * a + bshift, 0.0)                          # (2F, B*N)

    # mlp conv2: one lane-dense (F, 2F) @ (2F, B*N) matmul
    o_ref[...] = (jnp.dot(w2_ref[...], y, preferred_element_type=jnp.float32)
                  + b2_ref[...])


# ------------------------------- wrapper ------------------------------------
def attentional_propagation(x, params):
    (wq, bq, wk, bk, wv, bv, wm, bm, w1, b1, gamma, beta, w2, b2) = params

    # Head-contiguous channel permutation.
    # PyTorch .view(b, dim, heads, n): channel c -> (d, h) = (c // HEADS, c % HEADS).
    # New channel c' = h*DIM + d  <=>  original channel (c' % DIM)*HEADS + (c' // DIM).
    perm = jnp.array([(c % DIM) * HEADS + (c // DIM) for c in range(F)],
                     dtype=jnp.int32)
    inv_sqrt_dim = 1.0 / math.sqrt(DIM)
    wq_p = wq[perm] * inv_sqrt_dim          # fold 1/sqrt(dim) into the q projection
    bq_p = bq[perm] * inv_sqrt_dim
    wk_p, bk_p = wk[perm], bk[perm]
    wv_p, bv_p = wv[perm], bv[perm]
    wm_p = wm[:, perm]                      # columns follow the permuted att layout

    wqkv = jnp.concatenate([wq_p, wk_p, wv_p], axis=0)             # (3F, F)
    bqkv = jnp.concatenate([bq_p, bk_p, bv_p], axis=0)             # (3F, 1)
    w1x, w1m = w1[:, :F], w1[:, F:]                                # (2F, F) each

    # Pre-broadcast biases to (·, B*N): aligned vadds in-kernel, no (·,1) columns.
    bqkv_b = jnp.broadcast_to(bqkv, (3 * F, BN))
    bm_b = jnp.broadcast_to(bm, (F, BN))
    b1_b = jnp.broadcast_to(b1, (F2, BN))
    b2_b = jnp.broadcast_to(b2, (F, BN))

    # Fold batch into the lane axis: (B, F, N) -> (F, B*N)
    x_flat = jnp.transpose(x, (1, 0, 2)).reshape(F, BN)

    inputs = (x_flat, wqkv, bqkv_b, wm_p, bm_b, w1x, w1m, b1_b,
              gamma, beta, w2, b2_b)

    def full_spec(a):
        shape = a.shape
        return pl.BlockSpec(shape, lambda i, _n=len(shape): (0,) * _n)

    out_flat = pl.pallas_call(
        _fused_kernel,
        grid=(1,),
        in_specs=[full_spec(a) for a in inputs],
        out_specs=pl.BlockSpec((F, BN), lambda i: (0, 0)),
        out_shape=jax.ShapeDtypeStruct((F, BN), jnp.float32),
        scratch_shapes=[pltpu.VMEM((3 * F, BN), jnp.float32),   # qkv
                        pltpu.VMEM((F, BN), jnp.float32)],      # att
        compiler_params=pltpu.CompilerParams(
            dimension_semantics=("arbitrary",)),
    )(*inputs)

    # (F, B*N) -> (B, F, N)
    return jnp.transpose(out_flat.reshape(F, B, N), (1, 0, 2))


# --------------------------- pure-JAX reference ------------------------------
def reference(x, params):
    (wq, bq, wk, bk, wv, bv, wm, bm, w1, b1, gamma, beta, w2, b2) = params

    def conv1x1(w, bias, t):
        return jnp.einsum('of,bfn->bon', w, t) + bias[None]

    q = conv1x1(wq, bq, x).reshape(B, DIM, HEADS, N)
    k = conv1x1(wk, bk, x).reshape(B, DIM, HEADS, N)
    v = conv1x1(wv, bv, x).reshape(B, DIM, HEADS, N)
    scores = jnp.einsum('bdhn,bdhm->bhnm', q, k) / (DIM ** 0.5)
    p = jax.nn.softmax(scores, axis=-1)
    att = jnp.einsum('bhnm,bdhm->bdhn', p, v).reshape(B, F, N)
    msg = conv1x1(wm, bm, att)
    cat = jnp.concatenate([x, msg], axis=1)
    h1 = conv1x1(w1, b1, cat)
    mean = jnp.mean(h1, axis=(0, 2), keepdims=True)
    var = jnp.mean((h1 - mean) ** 2, axis=(0, 2), keepdims=True)
    y = (h1 - mean) / jnp.sqrt(var + BN_EPS) * gamma[None] + beta[None]
    y = jnp.maximum(y, 0.0)
    return conv1x1(w2, b2, y)


# ------------------------------- main ----------------------------------------
if __name__ == "__main__":
    key = jax.random.PRNGKey(0)
    ks = jax.random.split(key, 12)

    x = jax.random.normal(ks[0], (B, F, N), dtype=jnp.float32)

    scale = 0.1
    wq = jax.random.normal(ks[1], (F, F), jnp.float32) * scale
    bq = jax.random.normal(ks[2], (F, 1), jnp.float32) * scale
    wk = jax.random.normal(ks[3], (F, F), jnp.float32) * scale
    bk = jax.random.normal(ks[4], (F, 1), jnp.float32) * scale
    wv = jax.random.normal(ks[5], (F, F), jnp.float32) * scale
    bv = jax.random.normal(ks[6], (F, 1), jnp.float32) * scale
    wm = jax.random.normal(ks[7], (F, F), jnp.float32) * scale
    bm = jax.random.normal(ks[8], (F, 1), jnp.float32) * scale
    w1 = jax.random.normal(ks[9], (F2, F2), jnp.float32) * scale
    b1 = jax.random.normal(ks[10], (F2, 1), jnp.float32) * scale
    gamma = jnp.ones((F2, 1), jnp.float32)        # BatchNorm1d weight init
    beta = jnp.zeros((F2, 1), jnp.float32)        # BatchNorm1d bias init
    w2 = jax.random.normal(ks[11], (F, F2), jnp.float32) * scale
    b2 = jnp.zeros((F, 1), jnp.float32)           # nn.init.constant_(mlp[-1].bias, 0.0)

    params = (wq, bq, wk, bk, wv, bv, wm, bm, w1, b1, gamma, beta, w2, b2)

    out = attentional_propagation(x, params)
    out = jax.block_until_ready(out)

    ref = reference(x, params)
    assert out.shape == (B, F, N) and out.dtype == jnp.float32
    assert jnp.allclose(out, ref, atol=1e-3, rtol=1e-3), (
        f"mismatch: max abs err {jnp.max(jnp.abs(out - ref))}")
    print("KERNEL_OK")
</pallas_src>

<mosaic_0001>
module attributes {stable_mosaic.version = 11 : i64} {
  func.func @_fused_kernel(%arg0: i32, %arg1: memref<32x256xf32, #tpu.memory_space<vmem>>, %arg2: memref<96x32xf32, #tpu.memory_space<vmem>>, %arg3: memref<96x256xf32, #tpu.memory_space<vmem>>, %arg4: memref<32x32xf32, #tpu.memory_space<vmem>>, %arg5: memref<32x256xf32, #tpu.memory_space<vmem>>, %arg6: memref<64x32xf32, #tpu.memory_space<vmem>>, %arg7: memref<64x32xf32, #tpu.memory_space<vmem>>, %arg8: memref<64x256xf32, #tpu.memory_space<vmem>>, %arg9: memref<64x1xf32, #tpu.memory_space<vmem>>, %arg10: memref<64x1xf32, #tpu.memory_space<vmem>>, %arg11: memref<32x64xf32, #tpu.memory_space<vmem>>, %arg12: memref<32x256xf32, #tpu.memory_space<vmem>>, %arg13: memref<32x256xf32, #tpu.memory_space<vmem>>, %arg14: memref<96x256xf32, #tpu.memory_space<vmem>>, %arg15: memref<32x256xf32, #tpu.memory_space<vmem>>) attributes {dimension_semantics = [#tpu.dimension_semantics<arbitrary>], iteration_bounds = array<i64: 1>, scalar_prefetch = 0 : i64, scratch_operands = 2 : i64, tpu.core_type = #tpu.core_type<tc>, window_params = [{pipeline_mode = #tpu.pipeline_mode<synchronous>, transform_indices = @transform_0, window_bounds = array<i64: 32, 256>}, {pipeline_mode = #tpu.pipeline_mode<synchronous>, transform_indices = @transform_1, window_bounds = array<i64: 96, 32>}, {pipeline_mode = #tpu.pipeline_mode<synchronous>, transform_indices = @transform_2, window_bounds = array<i64: 96, 256>}, {pipeline_mode = #tpu.pipeline_mode<synchronous>, transform_indices = @transform_3, window_bounds = array<i64: 32, 32>}, {pipeline_mode = #tpu.pipeline_mode<synchronous>, transform_indices = @transform_4, window_bounds = array<i64: 32, 256>}, {pipeline_mode = #tpu.pipeline_mode<synchronous>, transform_indices = @transform_5, window_bounds = array<i64: 64, 32>}, {pipeline_mode = #tpu.pipeline_mode<synchronous>, transform_indices = @transform_6, window_bounds = array<i64: 64, 32>}, {pipeline_mode = #tpu.pipeline_mode<synchronous>, transform_indices = @transform_7, window_bounds = array<i64: 64, 256>}, {pipeline_mode = #tpu.pipeline_mode<synchronous>, transform_indices = @transform_8, window_bounds = array<i64: 64, 1>}, {pipeline_mode = #tpu.pipeline_mode<synchronous>, transform_indices = @transform_9, window_bounds = array<i64: 64, 1>}, {pipeline_mode = #tpu.pipeline_mode<synchronous>, transform_indices = @transform_10, window_bounds = array<i64: 32, 64>}, {pipeline_mode = #tpu.pipeline_mode<synchronous>, transform_indices = @transform_11, window_bounds = array<i64: 32, 256>}, {pipeline_mode = #tpu.pipeline_mode<synchronous>, transform_indices = @transform_12, window_bounds = array<i64: 32, 256>}]} {
    %c0 = arith.constant 0 : index
    %c0_0 = arith.constant 0 : index
    %0 = vector.load %arg2[%c0, %c0_0] : memref<96x32xf32, #tpu.memory_space<vmem>>, vector<96x32xf32>
    %c0_1 = arith.constant 0 : index
    %c0_2 = arith.constant 0 : index
    %1 = vector.load %arg1[%c0_1, %c0_2] : memref<32x256xf32, #tpu.memory_space<vmem>>, vector<32x256xf32>
    %cst = arith.constant dense<0.000000e+00> : vector<96x256xf32>
    %2 = tpu.matmul %0, %1, %cst {dimension_numbers = #tpu.dot_dimension_numbers<[1], [0], [0], [1], [0, 0, 1, 1], [], []>} : vector<96x32xf32>, vector<32x256xf32>, vector<96x256xf32> -> vector<96x256xf32>
    %c0_3 = arith.constant 0 : index
    %c0_4 = arith.constant 0 : index
    %3 = vector.load %arg3[%c0_3, %c0_4] : memref<96x256xf32, #tpu.memory_space<vmem>>, vector<96x256xf32>
    %4 = arith.addf %2, %3 : vector<96x256xf32>
    %c0_5 = arith.constant 0 : index
    %c0_6 = arith.constant 0 : index
    %5 = vector.load %arg14[%c0_5, %c0_6] : memref<96x256xf32, #tpu.memory_space<vmem>>, vector<96x256xf32>
    tpu.vector_store %arg14[%c0_5, %c0_6], %4 {strides = array<i32>} : memref<96x256xf32, #tpu.memory_space<vmem>>, vector<96x256xf32>,
    %c0_i32 = arith.constant 0 : i32
    %c4_i32 = arith.constant 4 : i32
    %6 = arith.addi %c0_i32, %c4_i32 : i32
    %c1_i32 = arith.constant 1 : i32
    scf.for %arg16 = %c0_i32 to %6 step %c1_i32  : i32 {
      %c8_i32 = arith.constant 8 : i32
      %51 = arith.muli %arg16, %c8_i32 : i32
      %52 = tpu.assume_multiple %51, 8 : i32
      %53 = arith.index_cast %52 : i32 to index
      %c0_46 = arith.constant 0 : index
      %54 = vector.load %arg14[%53, %c0_46] : memref<96x256xf32, #tpu.memory_space<vmem>>, vector<8x128xf32>
      %c32_i32 = arith.constant 32 : i32
      %55 = arith.addi %c32_i32, %52 : i32
      %56 = arith.index_cast %55 : i32 to index
      %c0_47 = arith.constant 0 : index
      %57 = vector.load %arg14[%56, %c0_47] : memref<96x256xf32, #tpu.memory_space<vmem>>, vector<8x128xf32>
      %c64_i32 = arith.constant 64 : i32
      %58 = arith.addi %c64_i32, %52 : i32
      %59 = arith.index_cast %58 : i32 to index
      %c0_48 = arith.constant 0 : index
      %60 = vector.load %arg14[%59, %c0_48] : memref<96x256xf32, #tpu.memory_space<vmem>>, vector<8x128xf32>
      %cst_49 = arith.constant dense<0.000000e+00> : vector<128x128xf32>
      %61 = tpu.matmul %57, %54, %cst_49 {dimension_numbers = #tpu.dot_dimension_numbers<[0], [0], [1], [1], [0, 1, 1, 1], [], []>} : vector<8x128xf32>, vector<8x128xf32>, vector<128x128xf32> -> vector<128x128xf32>
      %cst_50 = arith.constant dense<0xFF800000> : vector<128xf32>
      %62 = vector.multi_reduction <maximumf>, %61, %cst_50 [0] : vector<128x128xf32> to vector<128xf32>
      %63 = vector.shape_cast %62 : vector<128xf32> to vector<1x128xf32>
      %64 = vector.broadcast %63 : vector<1x128xf32> to vector<128x128xf32>
      %65 = arith.subf %61, %64 : vector<128x128xf32>
      %66 = math.exp %65 : vector<128x128xf32>
      %cst_51 = arith.constant dense<0.000000e+00> : vector<128xf32>
      %67 = vector.multi_reduction <add>, %66, %cst_51 [0] : vector<128x128xf32> to vector<128xf32>
      %68 = vector.shape_cast %67 : vector<128xf32> to vector<1x128xf32>
      %cst_52 = arith.constant dense<0.000000e+00> : vector<8x128xf32>
      %69 = tpu.matmul %60, %66, %cst_52 {dimension_numbers = #tpu.dot_dimension_numbers<[1], [0], [0], [1], [0, 0, 1, 1], [], []>} : vector<8x128xf32>, vector<128x128xf32>, vector<8x128xf32> -> vector<8x128xf32>
      %70 = tpu.reciprocal %68 {approx = true} : vector<1x128xf32> -> vector<1x128xf32>
      %71 = vector.broadcast %70 : vector<1x128xf32> to vector<8x128xf32>
      %72 = arith.mulf %69, %71 : vector<8x128xf32>
      %73 = arith.index_cast %52 : i32 to index
      %c0_53 = arith.constant 0 : index
      %74 = vector.load %arg15[%73, %c0_53] : memref<32x256xf32, #tpu.memory_space<vmem>>, vector<8x128xf32>
      tpu.vector_store %arg15[%73, %c0_53], %72 {strides = array<i32>} : memref<32x256xf32, #tpu.memory_space<vmem>>, vector<8x128xf32>,
    }
    %c4_i32_7 = arith.constant 4 : i32
    %c0_i32_8 = arith.constant 0 : i32
    %c4_i32_9 = arith.constant 4 : i32
    %7 = arith.addi %c0_i32_8, %c4_i32_9 : i32
    %c1_i32_10 = arith.constant 1 : i32
    scf.for %arg16 = %c0_i32_8 to %7 step %c1_i32_10  : i32 {
      %c8_i32 = arith.constant 8 : i32
      %51 = arith.muli %arg16, %c8_i32 : i32
      %52 = tpu.assume_multiple %51, 8 : i32
      %53 = arith.index_cast %52 : i32 to index
      %c128 = arith.constant 128 : index
      %54 = vector.load %arg14[%53, %c128] : memref<96x256xf32, #tpu.memory_space<vmem>>, vector<8x128xf32>
      %c32_i32 = arith.constant 32 : i32
      %55 = arith.addi %c32_i32, %52 : i32
      %56 = arith.index_cast %55 : i32 to index
      %c128_46 = arith.constant 128 : index
      %57 = vector.load %arg14[%56, %c128_46] : memref<96x256xf32, #tpu.memory_space<vmem>>, vector<8x128xf32>
      %c64_i32 = arith.constant 64 : i32
      %58 = arith.addi %c64_i32, %52 : i32
      %59 = arith.index_cast %58 : i32 to index
      %c128_47 = arith.constant 128 : index
      %60 = vector.load %arg14[%59, %c128_47] : memref<96x256xf32, #tpu.memory_space<vmem>>, vector<8x128xf32>
      %cst_48 = arith.constant dense<0.000000e+00> : vector<128x128xf32>
      %61 = tpu.matmul %57, %54, %cst_48 {dimension_numbers = #tpu.dot_dimension_numbers<[0], [0], [1], [1], [0, 1, 1, 1], [], []>} : vector<8x128xf32>, vector<8x128xf32>, vector<128x128xf32> -> vector<128x128xf32>
      %cst_49 = arith.constant dense<0xFF800000> : vector<128xf32>
      %62 = vector.multi_reduction <maximumf>, %61, %cst_49 [0] : vector<128x128xf32> to vector<128xf32>
      %63 = vector.shape_cast %62 : vector<128xf32> to vector<1x128xf32>
      %64 = vector.broadcast %63 : vector<1x128xf32> to vector<128x128xf32>
      %65 = arith.subf %61, %64 : vector<128x128xf32>
      %66 = math.exp %65 : vector<128x128xf32>
      %cst_50 = arith.constant dense<0.000000e+00> : vector<128xf32>
      %67 = vector.multi_reduction <add>, %66, %cst_50 [0] : vector<128x128xf32> to vector<128xf32>
      %68 = vector.shape_cast %67 : vector<128xf32> to vector<1x128xf32>
      %cst_51 = arith.constant dense<0.000000e+00> : vector<8x128xf32>
      %69 = tpu.matmul %60, %66, %cst_51 {dimension_numbers = #tpu.dot_dimension_numbers<[1], [0], [0], [1], [0, 0, 1, 1], [], []>} : vector<8x128xf32>, vector<128x128xf32>, vector<8x128xf32> -> vector<8x128xf32>
      %70 = tpu.reciprocal %68 {approx = true} : vector<1x128xf32> -> vector<1x128xf32>
      %71 = vector.broadcast %70 : vector<1x128xf32> to vector<8x128xf32>
      %72 = arith.mulf %69, %71 : vector<8x128xf32>
      %73 = arith.index_cast %52 : i32 to index
      %c128_52 = arith.constant 128 : index
      %74 = vector.load %arg15[%73, %c128_52] : memref<32x256xf32, #tpu.memory_space<vmem>>, vector<8x128xf32>
      tpu.vector_store %arg15[%73, %c128_52], %72 {strides = array<i32>} : memref<32x256xf32, #tpu.memory_space<vmem>>, vector<8x128xf32>,
    }
    %c4_i32_11 = arith.constant 4 : i32
    %c0_12 = arith.constant 0 : index
    %c0_13 = arith.constant 0 : index
    %8 = vector.load %arg4[%c0_12, %c0_13] : memref<32x32xf32, #tpu.memory_space<vmem>>, vector<32x32xf32>
    %c0_14 = arith.constant 0 : index
    %c0_15 = arith.constant 0 : index
    %9 = vector.load %arg15[%c0_14, %c0_15] : memref<32x256xf32, #tpu.memory_space<vmem>>, vector<32x256xf32>
    %cst_16 = arith.constant dense<0.000000e+00> : vector<32x256xf32>
    %10 = tpu.matmul %8, %9, %cst_16 {dimension_numbers = #tpu.dot_dimension_numbers<[1], [0], [0], [1], [0, 0, 1, 1], [], []>} : vector<32x32xf32>, vector<32x256xf32>, vector<32x256xf32> -> vector<32x256xf32>
    %c0_17 = arith.constant 0 : index
    %c0_18 = arith.constant 0 : index
    %11 = vector.load %arg5[%c0_17, %c0_18] : memref<32x256xf32, #tpu.memory_space<vmem>>, vector<32x256xf32>
    %12 = arith.addf %10, %11 : vector<32x256xf32>
    %c0_19 = arith.constant 0 : index
    %c0_20 = arith.constant 0 : index
    %13 = vector.load %arg6[%c0_19, %c0_20] : memref<64x32xf32, #tpu.memory_space<vmem>>, vector<64x32xf32>
    %c0_21 = arith.constant 0 : index
    %c0_22 = arith.constant 0 : index
    %14 = vector.load %arg1[%c0_21, %c0_22] : memref<32x256xf32, #tpu.memory_space<vmem>>, vector<32x256xf32>
    %cst_23 = arith.constant dense<0.000000e+00> : vector<64x256xf32>
    %15 = tpu.matmul %13, %14, %cst_23 {dimension_numbers = #tpu.dot_dimension_numbers<[1], [0], [0], [1], [0, 0, 1, 1], [], []>} : vector<64x32xf32>, vector<32x256xf32>, vector<64x256xf32> -> vector<64x256xf32>
    %c0_24 = arith.constant 0 : index
    %c0_25 = arith.constant 0 : index
    %16 = vector.load %arg7[%c0_24, %c0_25] : memref<64x32xf32, #tpu.memory_space<vmem>>, vector<64x32xf32>
    %cst_26 = arith.constant dense<0.000000e+00> : vector<64x256xf32>
    %17 = tpu.matmul %16, %12, %cst_26 {dimension_numbers = #tpu.dot_dimension_numbers<[1], [0], [0], [1], [0, 0, 1, 1], [], []>} : vector<64x32xf32>, vector<32x256xf32>, vector<64x256xf32> -> vector<64x256xf32>
    %18 = arith.addf %15, %17 : vector<64x256xf32>
    %c0_27 = arith.constant 0 : index
    %c0_28 = arith.constant 0 : index
    %19 = vector.load %arg8[%c0_27, %c0_28] : memref<64x256xf32, #tpu.memory_space<vmem>>, vector<64x256xf32>
    %20 = arith.addf %18, %19 : vector<64x256xf32>
    %cst_29 = arith.constant dense<0.000000e+00> : vector<64xf32>
    %21 = vector.multi_reduction <add>, %20, %cst_29 [1] : vector<64x256xf32> to vector<64xf32>
    %22 = vector.shape_cast %21 : vector<64xf32> to vector<64x1xf32>
    %cst_30 = arith.constant 2.560000e+02 : f32
    %23 = vector.broadcast %cst_30 : f32 to vector<64x1xf32>
    %24 = arith.divf %22, %23 : vector<64x1xf32>
    %25 = vector.broadcast %24 : vector<64x1xf32> to vector<64x256xf32>
    %26 = arith.subf %20, %25 : vector<64x256xf32>
    %27 = arith.mulf %26, %26 : vector<64x256xf32>
    %cst_31 = arith.constant dense<0.000000e+00> : vector<64xf32>
    %28 = vector.multi_reduction <add>, %27, %cst_31 [1] : vector<64x256xf32> to vector<64xf32>
    %29 = vector.shape_cast %28 : vector<64xf32> to vector<64x1xf32>
    %cst_32 = arith.constant 2.560000e+02 : f32
    %30 = vector.broadcast %cst_32 : f32 to vector<64x1xf32>
    %31 = arith.divf %29, %30 : vector<64x1xf32>
    %c0_33 = arith.constant 0 : index
    %c0_34 = arith.constant 0 : index
    %32 = vector.load %arg9[%c0_33, %c0_34] : memref<64x1xf32, #tpu.memory_space<vmem>>, vector<64x1xf32>
    %cst_35 = arith.constant 9.99999974E-6 : f32
    %33 = vector.broadcast %cst_35 : f32 to vector<64x1xf32>
    %34 = arith.addf %31, %33 : vector<64x1xf32>
    %35 = math.rsqrt %34 : vector<64x1xf32>
    %36 = arith.mulf %32, %35 : vector<64x1xf32>
    %c0_36 = arith.constant 0 : index
    %c0_37 = arith.constant 0 : index
    %37 = vector.load %arg10[%c0_36, %c0_37] : memref<64x1xf32, #tpu.memory_space<vmem>>, vector<64x1xf32>
    %38 = arith.mulf %24, %36 : vector<64x1xf32>
    %39 = arith.subf %37, %38 : vector<64x1xf32>
    %40 = vector.broadcast %36 : vector<64x1xf32> to vector<64x256xf32>
    %41 = arith.mulf %20, %40 : vector<64x256xf32>
    %42 = vector.broadcast %39 : vector<64x1xf32> to vector<64x256xf32>
    %43 = arith.addf %41, %42 : vector<64x256xf32>
    %cst_38 = arith.constant 0.000000e+00 : f32
    %44 = vector.broadcast %cst_38 : f32 to vector<64x256xf32>
    %45 = arith.maximumf %43, %44 : vector<64x256xf32>
    %c0_39 = arith.constant 0 : index
    %c0_40 = arith.constant 0 : index
    %46 = vector.load %arg11[%c0_39, %c0_40] : memref<32x64xf32, #tpu.memory_space<vmem>>, vector<32x64xf32>
    %cst_41 = arith.constant dense<0.000000e+00> : vector<32x256xf32>
    %47 = tpu.matmul %46, %45, %cst_41 {dimension_numbers = #tpu.dot_dimension_numbers<[1], [0], [0], [1], [0, 0, 1, 1], [], []>} : vector<32x64xf32>, vector<64x256xf32>, vector<32x256xf32> -> vector<32x256xf32>
    %c0_42 = arith.constant 0 : index
    %c0_43 = arith.constant 0 : index
    %48 = vector.load %arg12[%c0_42, %c0_43] : memref<32x256xf32, #tpu.memory_space<vmem>>, vector<32x256xf32>
    %49 = arith.addf %47, %48 : vector<32x256xf32>
    %c0_44 = arith.constant 0 : index
    %c0_45 = arith.constant 0 : index
    %50 = vector.load %arg13[%c0_44, %c0_45] : memref<32x256xf32, #tpu.memory_space<vmem>>, vector<32x256xf32>
    tpu.vector_store %arg13[%c0_44, %c0_45], %49 {strides = array<i32>} : memref<32x256xf32, #tpu.memory_space<vmem>>, vector<32x256xf32>,
    return
  }
  func.func @transform_0(%arg0: i32) -> (i32, i32) {
    %c0_i32 = arith.constant 0 : i32
    %c0_i32_0 = arith.constant 0 : i32
    %c0_i32_1 = arith.constant 0 : i32
    return %c0_i32, %c0_i32_0 : i32, i32
  }
  func.func @transform_1(%arg0: i32) -> (i32, i32) {
    %c0_i32 = arith.constant 0 : i32
    %c0_i32_0 = arith.constant 0 : i32
    %c0_i32_1 = arith.constant 0 : i32
    return %c0_i32, %c0_i32_0 : i32, i32
  }
  func.func @transform_2(%arg0: i32) -> (i32, i32) {
    %c0_i32 = arith.constant 0 : i32
    %c0_i32_0 = arith.constant 0 : i32
    %c0_i32_1 = arith.constant 0 : i32
    return %c0_i32, %c0_i32_0 : i32, i32
  }
  func.func @transform_3(%arg0: i32) -> (i32, i32) {
    %c0_i32 = arith.constant 0 : i32
    %c0_i32_0 = arith.constant 0 : i32
    %c0_i32_1 = arith.constant 0 : i32
    return %c0_i32, %c0_i32_0 : i32, i32
  }
  func.func @transform_4(%arg0: i32) -> (i32, i32) {
    %c0_i32 = arith.constant 0 : i32
    %c0_i32_0 = arith.constant 0 : i32
    %c0_i32_1 = arith.constant 0 : i32
    return %c0_i32, %c0_i32_0 : i32, i32
  }
  func.func @transform_5(%arg0: i32) -> (i32, i32) {
    %c0_i32 = arith.constant 0 : i32
    %c0_i32_0 = arith.constant 0 : i32
    %c0_i32_1 = arith.constant 0 : i32
    return %c0_i32, %c0_i32_0 : i32, i32
  }
  func.func @transform_6(%arg0: i32) -> (i32, i32) {
    %c0_i32 = arith.constant 0 : i32
    %c0_i32_0 = arith.constant 0 : i32
    %c0_i32_1 = arith.constant 0 : i32
    return %c0_i32, %c0_i32_0 : i32, i32
  }
  func.func @transform_7(%arg0: i32) -> (i32, i32) {
    %c0_i32 = arith.constant 0 : i32
    %c0_i32_0 = arith.constant 0 : i32
    %c0_i32_1 = arith.constant 0 : i32
    return %c0_i32, %c0_i32_0 : i32, i32
  }
  func.func @transform_8(%arg0: i32) -> (i32, i32) {
    %c0_i32 = arith.constant 0 : i32
    %c0_i32_0 = arith.constant 0 : i32
    %c0_i32_1 = arith.constant 0 : i32
    return %c0_i32, %c0_i32_0 : i32, i32
  }
  func.func @transform_9(%arg0: i32) -> (i32, i32) {
    %c0_i32 = arith.constant 0 : i32
    %c0_i32_0 = arith.constant 0 : i32
    %c0_i32_1 = arith.constant 0 : i32
    return %c0_i32, %c0_i32_0 : i32, i32
  }
  func.func @transform_10(%arg0: i32) -> (i32, i32) {
    %c0_i32 = arith.constant 0 : i32
    %c0_i32_0 = arith.constant 0 : i32
    %c0_i32_1 = arith.constant 0 : i32
    return %c0_i32, %c0_i32_0 : i32, i32
  }
  func.func @transform_11(%arg0: i32) -> (i32, i32) {
    %c0_i32 = arith.constant 0 : i32
    %c0_i32_0 = arith.constant 0 : i32
    %c0_i32_1 = arith.constant 0 : i32
    return %c0_i32, %c0_i32_0 : i32, i32
  }
  func.func @transform_12(%arg0: i32) -> (i32, i32) {
    %c0_i32 = arith.constant 0 : i32
    %c0_i32_0 = arith.constant 0 : i32
    %c0_i32_1 = arith.constant 0 : i32
    return %c0_i32, %c0_i32_0 : i32, i32
  }
}

</mosaic_0001>

<bundles_post_ra>
// kernel: tpu_custom_call.1
= control target key start
LH: loop header
LB: loop body
LE: loop exit
PB: predicated region body
PF: predicated region fallthrough
CT: control target
= control target key end

     0   :  { %17 = vsyncpa [#allocation5], 0  ;;  %s3349_s0 = inlined_call_operand.vmem [shape: f32[32,256], index: 0, kind: input, shape index: {}]   ;;  %s3350_s1 = inlined_call_operand.vmem [shape: f32[96,32], index: 1, kind: input, shape index: {}]   ;;  %s3351_s2 = inlined_call_operand.vmem [shape: f32[96,256], index: 2, kind: input, shape index: {}]   ;;  %s3352_s3 = inlined_call_operand.hbm [shape: f32[32,32], index: 3, kind: input, shape index: {}]   ;;  %s3353_s4 = inlined_call_operand.vmem [shape: f32[32,256], index: 4, kind: input, shape index: {}]   ;;  %s3354_s5 = inlined_call_operand.vmem [shape: f32[64,32], index: 5, kind: input, shape index: {}]   ;;  %s3355_s6 = inlined_call_operand.vmem [shape: f32[64,32], index: 6, kind: input, shape index: {}]   ;;  %s3356_s7 = inlined_call_operand.vmem [shape: f32[64,256], index: 7, kind: input, shape index: {}]   ;;  %s3357_s8 = inlined_call_operand.vmem [shape: f32[64,1], index: 8, kind: input, shape index: {}]   ;;  %s3358_s9 = inlined_call_operand.vmem [shape: f32[64,1], index: 9, kind: input, shape index: {}]   ;;  %s3359_s10 = inlined_call_operand.hbm [shape: f32[32,64], index: 10, kind: input, shape index: {}]   ;;  %s3360_s11 = inlined_call_operand.hbm [shape: f32[32,256], index: 11, kind: input, shape index: {}]   ;;  %s3361_s12 = inlined_call_operand.hbm [shape: f32[32,256], index: 12, kind: output, shape index: {}]  }
   0x1   :  { %18 = vsyncpa [#allocation8], 0 }
   0x2   :  { %19 = vsyncpa [#allocation6], 0  ;;  %s2567_s21 = smov [#allocation7]   ;;  %s2568_s23 = smov [#allocation4]  }
   0x3   :  { %s55_s22 = sshll.u32 %s2567_s21, 4  ;;  %s31_s24 = sshll.u32 %s2568_s23, 4  ;;  %s56_s22 = int_to_ptr.vmem [resolvable:$true] %s55_s22  ;;  %s32_s24 = int_to_ptr.vmem [resolvable:$true] %s31_s24 }
   0x4   :  { %s2473_s25 = scalar_lea.vmem %s56_s22, 512  ;;  %p2478_p1 = scmp.lt.s32.totalorder %s56_s22, %s56_s22 }
   0x5   :  { %p2474_p0 = scmp.ne.s32.totalorder %s56_s22, %s2473_s25  ;;  %p2479_p2 = scmp.lt.s32.totalorder %s2473_s25, %s2473_s25 }
   0x7   :  { %p2480_p3 = por %p2479_p2, %p2478_p1 }
   0x9   :  { %p2481_p4 = pnand %p2480_p3, %p2474_p0 }
   0xb   :  { %2484 = shalt.err (!%p2481_p4)
}
   0xc   :  { %s2569_s26 = smov 128   ;;  %s2570_s27 = smov 8  }
   0xd   :  { %61 = dma.hbm_to_vmem [thread:$0]  %s3359_s10, 512, %s56_s22, [#allocation8], %s2569_s26, %s2569_s26, %s2570_s27  }
   0xe   :  { %s2493_s30 = scalar_lea.vmem %s32_s24, 512  ;;  %p2498_p6 = scmp.lt.s32.totalorder %s32_s24, %s32_s24 }
   0xf   :  { %p2494_p5 = scmp.ne.s32.totalorder %s32_s24, %s2493_s30  ;;  %p2499_p7 = scmp.lt.s32.totalorder %s2493_s30, %s2493_s30 }
  0x11   :  { %p2500_p8 = por %p2499_p7, %p2498_p6 }
  0x13   :  { %p2501_p9 = pnand %p2500_p8, %p2494_p5 }
  0x15   :  { %2504 = shalt.err (!%p2501_p9)
}
  0x16   :  { %37 = dma.hbm_to_vmem [thread:$0]  %s3352_s3, 512, %s32_s24, [#allocation5], %s2569_s26, %s2569_s26, %s2570_s27  }
  0x17   :  { %s2571_s15 = smov [#allocation9]  }
  0x18   :  { %s67_s16 = sshll.u32 %s2571_s15, 4  ;;  %s68_s16 = int_to_ptr.vmem [resolvable:$true] %s67_s16 }
  0x19   :  { %s2513_s17 = scalar_lea.vmem %s68_s16, 1024  ;;  %p2518_p11 = scmp.lt.s32.totalorder %s68_s16, %s68_s16 }
  0x1a   :  { %p2514_p10 = scmp.ne.s32.totalorder %s68_s16, %s2513_s17  ;;  %p2519_p12 = scmp.lt.s32.totalorder %s2513_s17, %s2513_s17 }
  0x1c   :  { %p2520_p13 = por %p2519_p12, %p2518_p11 }
  0x1e   :  { %p2521_p0 = pnand %p2520_p13, %p2514_p10 }
  0x20   :  { %2524 = shalt.err (!%p2521_p0)
}
  0x21   :  { %s2572_s10 = smov 256   ;;  %s2573_s18 = smov 16  }
  0x22   :  { %73 = dma.hbm_to_vmem [thread:$0]  %s3360_s11, 1024, %s68_s16, [#allocation8], %s2572_s10, %s2572_s10, %s2573_s18  }
  0x23   :  { %2553 = dma.done.wait [#allocation5], 512  }
  0x24   :  { %2554 = vsyncadd [#allocation5], 4294966784 }
  0x25   :  { %2555 = dma.done.wait [#allocation8], 1536  }
  0x26   :  { %2556 = vsyncadd [#allocation8], 4294965760  ;;  %v2574_v0 = vmov 0.0   ;;  %v102_v1 = vld [vmem:[%s3349_s0 + $0x38] sm:$0xff]  ;;  %v101_v2 = vld [vmem:[%s3349_s0 + $0x30] sm:$0xff]  ;;  %vm127_vm0 = vcmask 261120  }
  0x27   :  { %228 = vmatprep.mubr.f32.mxu0 %v2574_v0  ;;  %264 = vmatprep.mubr.f32.mxu1 %v2574_v0  ;;  %v100_v3 = vld [vmem:[%s3349_s0 + $0x28] sm:$0xff]  ;;  %v99_v4 = vld [vmem:[%s3349_s0 + $0x20] sm:$0xff]  ;;  %v98_v5 = vld [vmem:[%s3349_s0 + $0x18] sm:$0xff]  ;;  %s2814_s28 = smov 0  }
  0x28   :  { %188 = vmatprep.subr.mxu0 %v102_v1  ;;  %2341 = vmatprep.subr.mxu1 %v102_v1  ;;  %v97_v6 = vld [vmem:[%s3349_s0 + $0x10] sm:$0xff]  ;;  %v96_v7 = vld [vmem:[%s3349_s0 + $0x8] sm:$0xff]  ;;  %v95_v8 = vld [vmem:[%s3349_s0] sm:$0xff] }
  0x29   :  { %189 = vmatpush1.msra.mxu0 %v101_v2  ;;  %2345 = vmatpush1.msra.mxu1 %v101_v2  ;;  %v83_v9 = vld [vmem:[%s3350_s1] sm:$0xff]  ;;  %v89_v10 = vld [vmem:[%s3350_s1 + $0x30] sm:$0xff]  ;;  %v84_v11 = vld [vmem:[%s3350_s1 + $0x8] sm:$0xff] }
  0x2a   :  { %190 = vmatprep.subr.mxu0 %v100_v3  ;;  %2342 = vmatprep.subr.mxu1 %v100_v3  ;;  %v90_v12 = vld [vmem:[%s3350_s1 + $0x38] sm:$0xff]  ;;  %v85_v13 = vld [vmem:[%s3350_s1 + $0x10] sm:$0xff]  ;;  %v91_v14 = vld [vmem:[%s3350_s1 + $0x40] sm:$0xff] }
  0x2b   :  { %191 = vmatpush1.msra.mxu0 %v99_v4  ;;  %2346 = vmatpush1.msra.mxu1 %v99_v4  ;;  %v86_v15 = vld [vmem:[%s3350_s1 + $0x18] sm:$0xff]  ;;  %v92_v16 = vld [vmem:[%s3350_s1 + $0x48] sm:$0xff]  ;;  %v87_v17 = vld [vmem:[%s3350_s1 + $0x20] sm:$0xff] }
  0x2c   :  { %192 = vmatprep.subr.mxu0 %v98_v5  ;;  %2343 = vmatprep.subr.mxu1 %v98_v5  ;;  %v93_v18 = vld [vmem:[%s3350_s1 + $0x50] sm:$0xff]  ;;  %v88_v19 = vld [vmem:[%s3350_s1 + $0x28] sm:$0xff]  ;;  %v94_v20 = vld [vmem:[%s3350_s1 + $0x58] sm:$0xff] }
  0x2d   :  { %193 = vmatpush1.msra.mxu0 %v97_v6  ;;  %2347 = vmatpush1.msra.mxu1 %v97_v6  ;;  %v103_v21 = vld [vmem:[%s3351_s2] sm:$0xff]  ;;  %v104_v25 = vld [vmem:[%s3351_s2 + $0x8] sm:$0xff]  ;;  %v105_v31 = vld [vmem:[%s3351_s2 + $0x10] sm:$0xff] }
  0x2e   :  { %194 = vmatprep.subr.mxu0 %v96_v7  ;;  %2344 = vmatprep.subr.mxu1 %v96_v7  ;;  %v115_v22 = vld [vmem:[%s3351_s2 + $0x60] sm:$0xff]  ;;  %v116_v26 = vld [vmem:[%s3351_s2 + $0x68] sm:$0xff]  ;;  %v117_v32 = vld [vmem:[%s3351_s2 + $0x70] sm:$0xff] }
  0x2f   :  { %195 = vmatpush1.msra.mxu0 %v95_v8  ;;  %2348 = vmatpush1.msra.mxu1 %v95_v8  ;;  %v106_v37 = vld [vmem:[%s3351_s2 + $0x18] sm:$0xff]  ;;  %v107_v43 = vld [vmem:[%s3351_s2 + $0x20] sm:$0xff]  ;;  %v108_v49 = vld [vmem:[%s3351_s2 + $0x28] sm:$0xff] }
  0x30   :  { %2059 = vmatmul.mubr.msk.f32.vlgmr.msra.gmra.mxu0 %vm127_vm0, %v83_v9  ;;  %2065 = vmatmul.mubr.msk.f32.vlgmr.msra.gmra.mxu1 %vm127_vm0, %v89_v10  ;;  %v118_v38 = vld [vmem:[%s3351_s2 + $0x78] sm:$0xff]  ;;  %v119_v44 = vld [vmem:[%s3351_s2 + $0x80] sm:$0xff]  ;;  %v120_v50 = vld [vmem:[%s3351_s2 + $0x88] sm:$0xff] }
  0x31   :  { %234 = vmatprep.mubr.f32.mxu0 %v2574_v0  ;;  %270 = vmatprep.mubr.f32.mxu1 %v2574_v0  ;;  %v109_v55 = vld [vmem:[%s3351_s2 + $0x30] sm:$0xff]  ;;  %v110_v61 = vld [vmem:[%s3351_s2 + $0x38] sm:$0xff]  ;;  %v111_v4 = vld [vmem:[%s3351_s2 + $0x40] sm:$0xff] }
  0x32   :  { %v121_v56 = vld [vmem:[%s3351_s2 + $0x90] sm:$0xff]  ;;  %v122_v62 = vld [vmem:[%s3351_s2 + $0x98] sm:$0xff]  ;;  %v123_v5 = vld [vmem:[%s3351_s2 + $0xa0] sm:$0xff] }
  0x33   :  { %v112_v10 = vld [vmem:[%s3351_s2 + $0x48] sm:$0xff] }
  0x34   :  { %2060 = vmatmul.mubr.msk.f32.gmra.mxu0 %vm127_vm0, %v84_v11  ;;  %2066 = vmatmul.mubr.msk.f32.gmra.mxu1 %vm127_vm0, %v90_v12  ;;  %v124_v11 = vld [vmem:[%s3351_s2 + $0xa8] sm:$0xff] }
  0x35   :  { %240 = vmatprep.mubr.f32.mxu0 %v2574_v0  ;;  %276 = vmatprep.mubr.f32.mxu1 %v2574_v0 }
  0x38   :  { %2061 = vmatmul.mubr.msk.f32.gmra.mxu0 %vm127_vm0, %v85_v13  ;;  %2067 = vmatmul.mubr.msk.f32.gmra.mxu1 %vm127_vm0, %v91_v14 }
  0x39   :  { %246 = vmatprep.mubr.f32.mxu0 %v2574_v0  ;;  %282 = vmatprep.mubr.f32.mxu1 %v2574_v0 }
  0x3c   :  { %2062 = vmatmul.mubr.msk.f32.gmra.mxu0 %vm127_vm0, %v86_v15  ;;  %2068 = vmatmul.mubr.msk.f32.gmra.mxu1 %vm127_vm0, %v92_v16  ;;  %v113_v16 = vld [vmem:[%s3351_s2 + $0x50] sm:$0xff] }
  0x3d   :  { %252 = vmatprep.mubr.f32.mxu0 %v2574_v0  ;;  %288 = vmatprep.mubr.f32.mxu1 %v2574_v0 }
  0x40   :  { %2063 = vmatmul.mubr.msk.f32.gmra.mxu0 %vm127_vm0, %v87_v17  ;;  %2069 = vmatmul.mubr.msk.f32.gmra.mxu1 %vm127_vm0, %v93_v18  ;;  %v125_v17 = vld [vmem:[%s3351_s2 + $0xb0] sm:$0xff] }
  0x41   :  { %258 = vmatprep.mubr.f32.mxu0 %v2574_v0  ;;  %294 = vmatprep.mubr.f32.mxu1 %v2574_v0 }
  0x44   :  { %2064 = vmatmul.mubr.msk.f32.gmra.mxu0 %vm127_vm0, %v88_v19  ;;  %2070 = vmatmul.mubr.msk.f32.gmra.mxu1 %vm127_vm0, %v94_v20 }
  0xf0   :  { %v230_v23 = vpop.f32.mrf.mxu0  ;;  %v266_v24 = vpop.f32.mrf.mxu1 }
  0xf1   :  { %v231_v27 = vadd.f32 %v230_v23, %v103_v21  ;;  %v267_v28 = vadd.f32 %v266_v24, %v115_v22  ;;  %v114_v22 = vld [vmem:[%s3351_s2 + $0x58] sm:$0xff] }
  0xf2   :  { %v232_v29 = vpop.f32.mrf.mxu0  ;;  %v268_v30 = vpop.f32.mrf.mxu1  ;;  %v126_v23 = vld [vmem:[%s3351_s2 + $0xb8] sm:$0xff] }
  0xf3   :  { %301 = vst [vmem:[#allocation2] sm:$0xff] %v231_v27  ;;  %313 = vst [vmem:[#allocation2 + $0x60] sm:$0xff] %v267_v28  ;;  %v233_v33 = vadd.f32 %v232_v29, %v104_v25  ;;  %v269_v34 = vadd.f32 %v268_v30, %v116_v26 }
  0xf4   :  { %v236_v35 = vpop.f32.mrf.mxu0  ;;  %v272_v36 = vpop.f32.mrf.mxu1 }
  0xf5   :  { %302 = vst [vmem:[#allocation2 + $0x8] sm:$0xff] %v233_v33  ;;  %314 = vst [vmem:[#allocation2 + $0x68] sm:$0xff] %v269_v34  ;;  %v237_v39 = vadd.f32 %v236_v35, %v105_v31  ;;  %v273_v40 = vadd.f32 %v272_v36, %v117_v32 }
  0xf6   :  { %v238_v41 = vpop.f32.mrf.mxu0  ;;  %v274_v42 = vpop.f32.mrf.mxu1 }
  0xf7   :  { %303 = vst [vmem:[#allocation2 + $0x10] sm:$0xff] %v237_v39  ;;  %315 = vst [vmem:[#allocation2 + $0x70] sm:$0xff] %v273_v40  ;;  %v239_v45 = vadd.f32 %v238_v41, %v106_v37  ;;  %v275_v46 = vadd.f32 %v274_v42, %v118_v38 }
  0xf8   :  { %v242_v47 = vpop.f32.mrf.mxu0  ;;  %v278_v48 = vpop.f32.mrf.mxu1 }
  0xf9   :  { %304 = vst [vmem:[#allocation2 + $0x18] sm:$0xff] %v239_v45  ;;  %316 = vst [vmem:[#allocation2 + $0x78] sm:$0xff] %v275_v46  ;;  %v243_v51 = vadd.f32 %v242_v47, %v107_v43  ;;  %v279_v52 = vadd.f32 %v278_v48, %v119_v44 }
  0xfa   :  { %v244_v53 = vpop.f32.mrf.mxu0  ;;  %v280_v54 = vpop.f32.mrf.mxu1 }
  0xfb   :  { %305 = vst [vmem:[#allocation2 + $0x20] sm:$0xff] %v243_v51  ;;  %317 = vst [vmem:[#allocation2 + $0x80] sm:$0xff] %v279_v52  ;;  %v245_v57 = vadd.f32 %v244_v53, %v108_v49  ;;  %v281_v58 = vadd.f32 %v280_v54, %v120_v50 }
  0xfc   :  { %v248_v59 = vpop.f32.mrf.mxu0  ;;  %v284_v60 = vpop.f32.mrf.mxu1 }
  0xfd   :  { %306 = vst [vmem:[#allocation2 + $0x28] sm:$0xff] %v245_v57  ;;  %318 = vst [vmem:[#allocation2 + $0x88] sm:$0xff] %v281_v58  ;;  %v249_v63 = vadd.f32 %v248_v59, %v109_v55  ;;  %v285_v1 = vadd.f32 %v284_v60, %v121_v56 }
  0xfe   :  { %v250_v2 = vpop.f32.mrf.mxu0  ;;  %v286_v3 = vpop.f32.mrf.mxu1 }
  0xff   :  { %307 = vst [vmem:[#allocation2 + $0x30] sm:$0xff] %v249_v63  ;;  %319 = vst [vmem:[#allocation2 + $0x90] sm:$0xff] %v285_v1  ;;  %v251_v6 = vadd.f32 %v250_v2, %v110_v61  ;;  %v287_v7 = vadd.f32 %v286_v3, %v122_v62 }
 0x100   :  { %v254_v8 = vpop.f32.mrf.mxu0  ;;  %v290_v9 = vpop.f32.mrf.mxu1 }
 0x101   :  { %308 = vst [vmem:[#allocation2 + $0x38] sm:$0xff] %v251_v6  ;;  %320 = vst [vmem:[#allocation2 + $0x98] sm:$0xff] %v287_v7  ;;  %v255_v12 = vadd.f32 %v254_v8, %v111_v4  ;;  %v291_v13 = vadd.f32 %v290_v9, %v123_v5 }
 0x102   :  { %v256_v14 = vpop.f32.mrf.mxu0  ;;  %v292_v15 = vpop.f32.mrf.mxu1 }
 0x103   :  { %309 = vst [vmem:[#allocation2 + $0x40] sm:$0xff] %v255_v12  ;;  %321 = vst [vmem:[#allocation2 + $0xa0] sm:$0xff] %v291_v13  ;;  %v257_v18 = vadd.f32 %v256_v14, %v112_v10  ;;  %v293_v19 = vadd.f32 %v292_v15, %v124_v11 }
 0x104   :  { %v260_v20 = vpop.f32.mrf.mxu0  ;;  %v296_v21 = vpop.f32.mrf.mxu1 }
 0x105   :  { %310 = vst [vmem:[#allocation2 + $0x48] sm:$0xff] %v257_v18  ;;  %322 = vst [vmem:[#allocation2 + $0xa8] sm:$0xff] %v293_v19  ;;  %v261_v24 = vadd.f32 %v260_v20, %v113_v16  ;;  %v297_v25 = vadd.f32 %v296_v21, %v125_v17 }
 0x106   :  { %v262_v26 = vpop.f32.mrf.mxu0  ;;  %v298_v27 = vpop.f32.mrf.mxu1 }
 0x107   :  { %311 = vst [vmem:[#allocation2 + $0x50] sm:$0xff] %v261_v24  ;;  %323 = vst [vmem:[#allocation2 + $0xb0] sm:$0xff] %v297_v25  ;;  %v263_v28 = vadd.f32 %v262_v26, %v114_v22  ;;  %v299_v29 = vadd.f32 %v298_v27, %v126_v23 }
 0x109   :  { %312 = vst [vmem:[#allocation2 + $0x58] sm:$0xff] %v263_v28  ;;  %324 = vst [vmem:[#allocation2 + $0xb8] sm:$0xff] %v299_v29 }
 0x10a LB: > { %s2820_s2 = sshll.u32 %s2561_s28, 3  ;;  %vm384_vm1 = vcmask 64512   ;;  %v2575_v48 = vmov 0.0   ;;  %vm2576_vm2 = vmmov 0   ;;  %s330_s28 = sadd.s32 1, %s2561_s28   ;;  %s2561_s28 = sphi %s2814_s28, %s330_s28  }
 0x10b   : > { %s338_s29 = sadd.s32 32, %s2820_s2  ;;  %s332_s30 = sshra.s32 %s2820_s2, 3  ;;  %2245 = vmatprep.subr.mxu1 %v2575_v48  ;;  %2277 = vmatprep.mubr.msk.f32.mxu1 %vm2576_vm2, %v2575_v48 }
 0x10c   : > { %s339_s13 = sshra.s32 %s338_s29, 3  ;;  %s2824_s14 = sshll.u32 %s332_s30, 4 }
 0x10d   : > { %s2144_s15 = sshll.u32 %s339_s13, 4  ;;  %s336_s16 = scalar_lea.vmem [#allocation2], %s2824_s14 }
 0x10e   : > { %s343_s17 = scalar_lea.vmem [#allocation2], %s2144_s15  ;;  %s345_s19 = sadd.s32 64, %s2820_s2 }
 0x10f   : > { %s346_s20 = sshra.s32 %s345_s19, 3  ;;  %s741_s22 = scalar_lea.vmem [#allocation3], %s2824_s14 }
 0x110   : > { %v337_v30 = vld [vmem:[%s336_s16] sm:$0xff]  ;;  %s2145_s3 = sshll.u32 %s346_s20, 4  ;;  %p327_p1 = scmp.ge.s32.totalorder %s330_s28, 4  }
 0x111   : > { %v344_v31 = vld [vmem:[%s343_s17] sm:$0xff]  ;;  %2219 = vmatprep.subr.mxu0 %v337_v30  ;;  %s350_s21 = scalar_lea.vmem [#allocation2], %s2145_s3  ;;  %s2893_s23 = smov (%p327_p1), 0  }
 0x112   : > { %352 = vxpose.xlu0.b32.start.end [1/1] (short) %v344_v31, 128  ;;  %2220 = vmatpush3.msra.mxu0 %v337_v30 }
 0x18e   : > { %v368_v32 = vpop.trf.xlu0 }
 0x18f   : > { %2221 = vmatprep.mubr.msk.f32.mxu0 %vm384_vm1, %v368_v32 }
 0x192   : > { %v369_v33 = vpop.trf.xlu0 }
 0x193   : > { %2222 = vmatmul.mubr.msk.f32.vlgmr.msra.gmra.mxu0 %vm384_vm1, %v369_v33 }
 0x196   : > { %v370_v34 = vpop.trf.xlu0 }
 0x197   : > { %2224 = vmatprep.mubr.msk.f32.mxu0 %vm384_vm1, %v370_v34 }
 0x19a   : > { %v371_v35 = vpop.trf.xlu0 }
 0x19b   : > { %2225 = vmatmul.mubr.msk.f32.gmra.mxu0 %vm384_vm1, %v371_v35 }
 0x19e   : > { %v372_v36 = vpop.trf.xlu0 }
 0x19f   : > { %2227 = vmatprep.mubr.msk.f32.mxu0 %vm384_vm1, %v372_v36 }
 0x1a2   : > { %v373_v37 = vpop.trf.xlu0 }
 0x1a3   : > { %2228 = vmatmul.mubr.msk.f32.gmra.mxu0 %vm384_vm1, %v373_v37 }
 0x1a6   : > { %v374_v38 = vpop.trf.xlu0 }
 0x1a7   : > { %2230 = vmatprep.mubr.msk.f32.mxu0 %vm384_vm1, %v374_v38 }
 0x1aa   : > { %v375_v39 = vpop.trf.xlu0 }
 0x1ab   : > { %2231 = vmatmul.mubr.msk.f32.gmra.mxu0 %vm384_vm1, %v375_v39 }
 0x1ae   : > { %v376_v40 = vpop.trf.xlu0 }
 0x1af   : > { %2233 = vmatprep.mubr.msk.f32.mxu0 %vm384_vm1, %v376_v40 }
 0x1b2   : > { %v377_v41 = vpop.trf.xlu0 }
 0x1b3   : > { %2234 = vmatmul.mubr.msk.f32.gmra.mxu0 %vm384_vm1, %v377_v41 }
 0x1b6   : > { %v378_v42 = vpop.trf.xlu0 }
 0x1b7   : > { %2236 = vmatprep.mubr.msk.f32.mxu0 %vm384_vm1, %v378_v42 }
 0x1ba   : > { %v379_v43 = vpop.trf.xlu0 }
 0x1bb   : > { %2237 = vmatmul.mubr.msk.f32.gmra.mxu0 %vm384_vm1, %v379_v43 }
 0x1be   : > { %v380_v44 = vpop.trf.xlu0 }
 0x1bf   : > { %2239 = vmatprep.mubr.msk.f32.mxu0 %vm384_vm1, %v380_v44 }
 0x1c2   : > { %v381_v45 = vpop.trf.xlu0 }
 0x1c3   : > { %2240 = vmatmul.mubr.msk.f32.gmra.mxu0 %vm384_vm1, %v381_v45 }
 0x1c6   : > { %v382_v46 = vpop.trf.xlu0 }
 0x1c7   : > { %2242 = vmatprep.mubr.msk.f32.mxu0 %vm384_vm1, %v382_v46 }
 0x1ca   : > { %v383_v47 = vpop.trf.xlu0 }
 0x1cb   : > { %2243 = vmatmul.mubr.msk.f32.gmra.mxu0 %vm384_vm1, %v383_v47 }
 0x253   : > { %v2223_v49 = vpop.f32.mrf.mxu0 }
 0x255   : > { %v499_v50 = vpop.f32.mrf.mxu0 }
 0x25b   : > { %v2226_v51 = vpop.f32.mrf.mxu0 }
 0x25d   : > { %v509_v52 = vpop.f32.mrf.mxu0 }
 0x263   : > { %v2229_v53 = vpop.f32.mrf.mxu0 }
 0x264   : > { %v579_v1 = vmax.f32 %v2223_v49, %v2229_v53 }
 0x265   : > { %v519_v54 = vpop.f32.mrf.mxu0 }
 0x266   : > { %v578_v62 = vmax.f32 %v499_v50, %v519_v54 }
 0x26b   : > { %v2232_v55 = vpop.f32.mrf.mxu0 }
 0x26c   : > { %v581_v2 = vmax.f32 %v2226_v51, %v2232_v55 }
 0x26d   : > { %v529_v56 = vpop.f32.mrf.mxu0 }
 0x26e   : > { %v580_v3 = vmax.f32 %v509_v52, %v529_v56 }
 0x273   : > { %v2235_v57 = vpop.f32.mrf.mxu0 }
 0x274   : > { %v583_v6 = vmax.f32 %v579_v1, %v2235_v57 }
 0x275   : > { %v539_v58 = vpop.f32.mrf.mxu0 }
 0x276   : > { %v582_v4 = vmax.f32 %v578_v62, %v539_v58 }
 0x27b   : > { %v2845_v59 = vpop.f32.mrf.mxu0 }
 0x27c   : > { %v585_v7 = vmax.f32 %v581_v2, %v2845_v59 }
 0x27d   : > { %v2847_v60 = vpop.f32.mrf.mxu0 }
 0x27e   : > { %v584_v8 = vmax.f32 %v580_v3, %v2847_v60 }
 0x283   : > { %v2849_v61 = vpop.f32.mrf.mxu0 }
 0x284   : > { %v587_v11 = vmax.f32 %v583_v6, %v2849_v61 }
 0x285   : > { %v2851_v63 = vpop.f32.mrf.mxu0 }
 0x286   : > { %v586_v9 = vmax.f32 %v582_v4, %v2851_v63 }
 0x288   : > { %v590_v14 = vmax.f32 %v586_v9, %v587_v11 }
 0x28b   : > { %v2244_v5 = vpop.f32.mrf.mxu0 }
 0x28c   : > { %v589_v12 = vmax.f32 %v585_v7, %v2244_v5 }
 0x28d   : > { %v569_v10 = vpop.f32.mrf.mxu0 }
 0x28e   : > { %v588_v13 = vmax.f32 %v584_v8, %v569_v10 }
 0x290   : > { %v591_v15 = vmax.f32 %v588_v13, %v589_v12 }
 0x292   : > { %v592_v16 = vmax.f32 %v590_v14, %v591_v15 }
 0x294   : > { %v593_v17 = vrot.slane %v592_v16, 4 }
 0x296   : > { %v594_v18 = vmax.f32 %v592_v16, %v593_v17 }
 0x298   : > { %v595_v19 = vrot.slane %v594_v18, 2 }
 0x29a   : > { %v596_v20 = vmax.f32 %v594_v18, %v595_v19 }
 0x29c   : > { %v597_v21 = vrot.slane %v596_v20, 1 }
 0x29e   : > { %v598_v22 = vmax.f32 %v596_v20, %v597_v21 }
 0x2a0   : > { %v599_v23 = vsub.f32 %v499_v50, %v598_v22  ;;  %v600_v24 = vsub.f32 %v2223_v49, %v598_v22  ;;  %v601_v25 = vsub.f32 %v509_v52, %v598_v22  ;;  %v602_v26 = vsub.f32 %v2226_v51, %v598_v22 }
 0x2a1   : > { %v603_v28 = vsub.f32 %v519_v54, %v598_v22  ;;  %v604_v31 = vsub.f32 %v2229_v53, %v598_v22  ;;  %v605_v33 = vsub.f32 %v529_v56, %v598_v22  ;;  %v606_v35 = vsub.f32 %v2232_v55, %v598_v22 }
 0x2a2   : > { %v615_v27 = vmul.f32 1.442695, %v599_v23  ;;  %v617_v29 = vmul.f32 1.442695, %v600_v24  ;;  %v619_v30 = vmul.f32 1.442695, %v601_v25  ;;  %v607_v37 = vsub.f32 %v539_v58, %v598_v22 }
 0x2a3   : > { %v621_v32 = vmul.f32 1.442695, %v602_v26  ;;  %v623_v34 = vmul.f32 1.442695, %v603_v28  ;;  %v625_v36 = vmul.f32 1.442695, %v604_v31  ;;  %v614_v39 = vsub.f32 %v2244_v5, %v598_v22 }
 0x2a4   : > { %2379 = vpow2.f32 %v615_v27  ;;  %v627_v38 = vmul.f32 1.442695, %v605_v33  ;;  %v608_v40 = vsub.f32 %v2235_v57, %v598_v22  ;;  %v613_v41 = vsub.f32 %v569_v10, %v598_v22  ;;  %v351_v24 = vld [vmem:[%s350_s21] sm:$0xff] }
 0x2a5   : > { %2381 = vpow2.f32 %v617_v29  ;;  %v629_v42 = vmul.f32 1.442695, %v606_v35  ;;  %v609_v43 = vsub.f32 %v2847_v60, %v598_v22  ;;  %v631_v44 = vmul.f32 1.442695, %v607_v37 }
 0x2a6   : > { %2383 = vpow2.f32 %v619_v30  ;;  %v612_v45 = vsub.f32 %v2849_v61, %v598_v22  ;;  %v645_v46 = vmul.f32 1.442695, %v614_v39  ;;  %v610_v47 = vsub.f32 %v2845_v59, %v598_v22 }
 0x2a7   : > { %2385 = vpow2.f32 %v621_v32  ;;  %v633_v49 = vmul.f32 1.442695, %v608_v40  ;;  %v611_v51 = vsub.f32 %v2851_v63, %v598_v22  ;;  %v643_v52 = vmul.f32 1.442695, %v613_v41 }
 0x2a8   : > { %2387 = vpow2.f32 %v623_v34  ;;  %v635_v54 = vmul.f32 1.442695, %v609_v43  ;;  %v641_v55 = vmul.f32 1.442695, %v612_v45  ;;  %v637_v58 = vmul.f32 1.442695, %v610_v47 }
 0x2a9   : > { %2389 = vpow2.f32 %v625_v36  ;;  %v639_v59 = vmul.f32 1.442695, %v611_v51 }
 0x2aa   : > { %2391 = vpow2.f32 %v627_v38 }
 0x2ab   : > { %2393 = vpow2.f32 %v629_v42 }
 0x2ac   : > { %2395 = vpow2.f32 %v631_v44 }
 0x2ad   : > { %2397 = vpow2.f32 %v645_v46 }
 0x2ae   : > { %2399 = vpow2.f32 %v633_v49 }
 0x2af   : > { %2401 = vpow2.f32 %v643_v52 }
 0x2b0   : > { %2403 = vpow2.f32 %v635_v54 }
 0x2b1   : > { %v2860_v50 = vpop.eup %2379  ;;  %2405 = vpow2.f32 %v641_v55 }
 0x2b2   : > { %v2863_v53 = vpop.eup %2381  ;;  %2407 = vpow2.f32 %v637_v58 }
 0x2b3   : > { %v647_v56 = vadd.f32 %v2863_v53, %v2860_v50  ;;  %v2867_v57 = vpop.eup %2383  ;;  %2409 = vpow2.f32 %v639_v59 }
 0x2b4   : > { %v2386_v61 = vpop.eup %2385 }
 0x2b5   : > { %v648_v60 = vadd.f32 %v2867_v57, %v647_v56  ;;  %v2388_v63 = vpop.eup %2387 }
 0x2b6   : > { %v2390_v2 = vpop.eup %2389 }
 0x2b7   : > { %v649_v62 = vadd.f32 %v2386_v61, %v648_v60  ;;  %v2392_v4 = vpop.eup %2391 }
 0x2b8   : > { %v2394_v6 = vpop.eup %2393 }
 0x2b9   : > { %v650_v1 = vadd.f32 %v2388_v63, %v649_v62  ;;  %v2396_v7 = vpop.eup %2395 }
 0x2ba   : > { %v2398_v9 = vpop.eup %2397 }
 0x2bb   : > { %v651_v3 = vadd.f32 %v2390_v2, %v650_v1  ;;  %v2400_v10 = vpop.eup %2399  ;;  %2246 = vmatpush3.msra.mxu1 %v2398_v9 }
 0x2bc   : > { %v2402_v12 = vpop.eup %2401  ;;  %2247 = vmatprep.subr.mxu1 %v2575_v48 }
 0x2bd   : > { %v652_v5 = vadd.f32 %v2392_v4, %v651_v3  ;;  %v2404_v13 = vpop.eup %2403  ;;  %2248 = vmatpush3.msra.mxu1 %v2402_v12 }
 0x2be   : > { %v2406_v15 = vpop.eup %2405  ;;  %2249 = vmatprep.subr.mxu1 %v2575_v48 }
 0x2bf   : > { %v653_v8 = vadd.f32 %v2394_v6, %v652_v5  ;;  %v2408_v16 = vpop.eup %2407  ;;  %2250 = vmatpush3.msra.mxu1 %v2406_v15 }
 0x2c0   : > { %v2410_v18 = vpop.eup %2409  ;;  %2251 = vmatprep.subr.mxu1 %v2575_v48 }
 0x2c1   : > { %v654_v11 = vadd.f32 %v2396_v7, %v653_v8  ;;  %2252 = vmatpush3.msra.mxu1 %v2410_v18 }
 0x2c2   : > { %2253 = vmatprep.subr.mxu1 %v2575_v48 }
 0x2c3   : > { %v655_v14 = vadd.f32 %v2400_v10, %v654_v11  ;;  %2254 = vmatpush3.msra.mxu1 %v2408_v16 }
 0x2c4   : > { %2255 = vmatprep.subr.mxu1 %v2575_v48 }
 0x2c5   : > { %v656_v17 = vadd.f32 %v2404_v13, %v655_v14  ;;  %2256 = vmatpush3.msra.mxu1 %v2404_v13 }
 0x2c6   : > { %2257 = vmatprep.subr.mxu1 %v2575_v48 }
 0x2c7   : > { %v657_v19 = vadd.f32 %v2408_v16, %v656_v17  ;;  %2258 = vmatpush3.msra.mxu1 %v2400_v10 }
 0x2c8   : > { %2259 = vmatprep.subr.mxu1 %v2575_v48 }
 0x2c9   : > { %v658_v20 = vadd.f32 %v2410_v18, %v657_v19  ;;  %2260 = vmatpush3.msra.mxu1 %v2396_v7 }
 0x2ca   : > { %2261 = vmatprep.subr.mxu1 %v2575_v48 }
 0x2cb   : > { %v659_v21 = vadd.f32 %v2406_v15, %v658_v20  ;;  %2262 = vmatpush3.msra.mxu1 %v2394_v6 }
 0x2cc   : > { %2263 = vmatprep.subr.mxu1 %v2575_v48 }
 0x2cd   : > { %v660_v22 = vadd.f32 %v2402_v12, %v659_v21  ;;  %2264 = vmatpush3.msra.mxu1 %v2392_v4 }
 0x2ce   : > { %2265 = vmatprep.subr.mxu1 %v2575_v48 }
 0x2cf   : > { %v661_v23 = vadd.f32 %v2398_v9, %v660_v22  ;;  %2266 = vmatpush3.msra.mxu1 %v2390_v2 }
 0x2d0   : > { %2267 = vmatprep.subr.mxu1 %v2575_v48 }
 0x2d1   : > { %2268 = vmatpush3.msra.mxu1 %v2388_v63  ;;  %v662_v25 = vrot.slane %v661_v23, 4 }
 0x2d2   : > { %2269 = vmatprep.subr.mxu1 %v2575_v48 }
 0x2d3   : > { %2270 = vmatpush3.msra.mxu1 %v2386_v61  ;;  %v663_v26 = vadd.f32 %v662_v25, %v661_v23 }
 0x2d4   : > { %2271 = vmatprep.subr.mxu1 %v2575_v48 }
 0x2d5   : > { %2272 = vmatpush3.msra.mxu1 %v2867_v57  ;;  %v664_v27 = vrot.slane %v663_v26, 2 }
 0x2d6   : > { %2273 = vmatprep.subr.mxu1 %v2575_v48 }
 0x2d7   : > { %2274 = vmatpush3.msra.mxu1 %v2863_v53  ;;  %v665_v28 = vadd.f32 %v664_v27, %v663_v26 }
 0x2d8   : > { %2275 = vmatprep.subr.mxu1 %v2575_v48 }
 0x2d9   : > { %2276 = vmatpush3.msra.mxu1 %v2860_v50  ;;  %v666_v29 = vrot.slane %v665_v28, 1 }
 0x2da   : > { %2278 = vmatmul.mubr.f32.vlgmr.msra.gmra.mxu1 %v351_v24 }
 0x2db   : > { %v667_v30 = vadd.f32 %v666_v29, %v665_v28 }
 0x2dd   : > { %2411 = vrcp.f32 %v667_v30 }
 0x2ea   : > { %v2412_v31 = vpop.eup %2411 }
 0x399   :  { %329 = sbr.rel (!%p327_p1) target bundleno = 266 (0x10a), region = 102 }
 0x39a   : > { %v734_v32 = vpop.f32.mrf.mxu1 }
 0x39b   : > { %v739_v33 = vmul.f32 %v2412_v31, %v734_v32 }
 0x39c   : > { %v2279_v34 = vpop.f32.mrf.mxu1 }
 0x39d   : > { %742 = vst [vmem:[%s741_s22] sm:$0xff] %v739_v33 }
 0x39e LB: > { %s2899_s24 = sshll.u32 %s2565_s23, 3  ;;  %v2577_v53 = vmov 0.0   ;;  %vm2578_vm3 = vmmov 0   ;;  %s748_s23 = sadd.s32 1, %s2565_s23   ;;  %s2565_s23 = sphi %s2893_s23, %s748_s23  }
 0x39f   : > { %s756_s25 = sadd.s32 32, %s2899_s24  ;;  %s750_s11 = sshra.s32 %s2899_s24, 3  ;;  %2306 = vmatprep.subr.mxu1 %v2577_v53  ;;  %2338 = vmatprep.mubr.msk.f32.mxu1 %vm2578_vm3, %v2577_v53 }
 0x3a0   : > { %s757_s26 = sshra.s32 %s756_s25, 3  ;;  %s2903_s27 = sshll.u32 %s750_s11, 4 }
 0x3a1   : > { %s2148_s1 = sshll.u32 %s757_s26, 4  ;;  %s754_s28 = scalar_lea.vmem [#allocation2], %s2903_s27 }
 0x3a2   : > { %v755_v48 = vld [vmem:[%s754_s28 + $0x8] sm:$0xff]  ;;  %s761_s2 = scalar_lea.vmem [#allocation2], %s2148_s1  ;;  %s763_s29 = sadd.s32 64, %s2899_s24 }
 0x3a3   : > { %v762_v35 = vld [vmem:[%s761_s2 + $0x8] sm:$0xff]  ;;  %2280 = vmatprep.subr.mxu0 %v755_v48  ;;  %s764_s30 = sshra.s32 %s763_s29, 3  ;;  %s1159_s15 = scalar_lea.vmem [#allocation3], %s2903_s27 }
 0x3a4   : > { %770 = vxpose.xlu0.b32.start.end [1/1] (short) %v762_v35, 128  ;;  %2281 = vmatpush3.msra.mxu0 %v755_v48  ;;  %s2149_s13 = sshll.u32 %s764_s30, 4  ;;  %p745_p2 = scmp.ge.s32.totalorder %s748_s23, 4  }
 0x3a5   : > { %s768_s14 = scalar_lea.vmem [#allocation2], %s2149_s13  ;;  %vm1905_vm4 = vcmask (%p745_p2), 523264  }
 0x420   : > { %v786_v36 = vpop.trf.xlu0 }
 0x421   : > { %2282 = vmatprep.mubr.msk.f32.mxu0 %vm384_vm1, %v786_v36 }
 0x424   : > { %v787_v37 = vpop.trf.xlu0 }
 0x425   : > { %2283 = vmatmul.mubr.msk.f32.vlgmr.msra.gmra.mxu0 %vm384_vm1, %v787_v37 }
 0x428   : > { %v788_v38 = vpop.trf.xlu0 }
 0x429   : > { %2285 = vmatprep.mubr.msk.f32.mxu0 %vm384_vm1, %v788_v38 }
 0x42c   : > { %v789_v39 = vpop.trf.xlu0 }
 0x42d   : > { %2286 = vmatmul.mubr.msk.f32.gmra.mxu0 %vm384_vm1, %v789_v39 }
 0x430   : > { %v790_v40 = vpop.trf.xlu0 }
 0x431   : > { %2288 = vmatprep.mubr.msk.f32.mxu0 %vm384_vm1, %v790_v40 }
 0x434   : > { %v791_v41 = vpop.trf.xlu0 }
 0x435   : > { %2289 = vmatmul.mubr.msk.f32.gmra.mxu0 %vm384_vm1, %v791_v41 }
 0x438   : > { %v792_v42 = vpop.trf.xlu0 }
 0x439   : > { %2291 = vmatprep.mubr.msk.f32.mxu0 %vm384_vm1, %v792_v42 }
 0x43c   : > { %v793_v43 = vpop.trf.xlu0 }
 0x43d   : > { %2292 = vmatmul.mubr.msk.f32.gmra.mxu0 %vm384_vm1, %v793_v43 }
 0x440   : > { %v794_v44 = vpop.trf.xlu0 }
 0x441   : > { %2294 = vmatprep.mubr.msk.f32.mxu0 %vm384_vm1, %v794_v44 }
 0x444   : > { %v795_v45 = vpop.trf.xlu0 }
 0x445   : > { %2295 = vmatmul.mubr.msk.f32.gmra.mxu0 %vm384_vm1, %v795_v45 }
 0x448   : > { %v796_v46 = vpop.trf.xlu0 }
 0x449   : > { %2297 = vmatprep.mubr.msk.f32.mxu0 %vm384_vm1, %v796_v46 }
 0x44c   : > { %v797_v47 = vpop.trf.xlu0 }
 0x44d   : > { %2298 = vmatmul.mubr.msk.f32.gmra.mxu0 %vm384_vm1, %v797_v47 }
 0x450   : > { %v798_v49 = vpop.trf.xlu0 }
 0x451   : > { %2300 = vmatprep.mubr.msk.f32.mxu0 %vm384_vm1, %v798_v49 }
 0x454   : > { %v799_v50 = vpop.trf.xlu0 }
 0x455   : > { %2301 = vmatmul.mubr.msk.f32.gmra.mxu0 %vm384_vm1, %v799_v50 }
 0x458   : > { %v800_v51 = vpop.trf.xlu0 }
 0x459   : > { %2303 = vmatprep.mubr.msk.f32.mxu0 %vm384_vm1, %v800_v51 }
 0x45c   : > { %v801_v52 = vpop.trf.xlu0 }
 0x45d   : > { %2304 = vmatmul.mubr.msk.f32.gmra.mxu0 %vm384_vm1, %v801_v52 }
 0x45e   :  { %1257 = vmatprep.mubr.f32.mxu0 (%p745_p2), %v2574_v0 }
 0x4e5   : > { %v2284_v54 = vpop.f32.mrf.mxu0 }
 0x4e7   : > { %v917_v55 = vpop.f32.mrf.mxu0 }
 0x4ed   : > { %v2287_v56 = vpop.f32.mrf.mxu0 }
 0x4ef   : > { %v927_v57 = vpop.f32.mrf.mxu0 }
 0x4f5   : > { %v2290_v58 = vpop.f32.mrf.mxu0 }
 0x4f6   : > { %v997_v6 = vmax.f32 %v2284_v54, %v2290_v58 }
 0x4f7   : > { %v937_v59 = vpop.f32.mrf.mxu0 }
 0x4f8   : > { %v996_v4 = vmax.f32 %v917_v55, %v937_v59 }
 0x4fd   : > { %v2293_v60 = vpop.f32.mrf.mxu0 }
 0x4fe   : > { %v999_v7 = vmax.f32 %v2287_v56, %v2293_v60 }
 0x4ff   : > { %v947_v61 = vpop.f32.mrf.mxu0 }
 0x500   : > { %v998_v8 = vmax.f32 %v927_v57, %v947_v61 }
 0x505   : > { %v2296_v62 = vpop.f32.mrf.mxu0 }
 0x506   : > { %v1001_v11 = vmax.f32 %v997_v6, %v2296_v62 }
 0x507   : > { %v957_v63 = vpop.f32.mrf.mxu0 }
 0x508   : > { %v1000_v9 = vmax.f32 %v996_v4, %v957_v63 }
 0x50d   : > { %v2924_v1 = vpop.f32.mrf.mxu0 }
 0x50e   : > { %v1003_v12 = vmax.f32 %v999_v7, %v2924_v1 }
 0x50f   : > { %v2926_v2 = vpop.f32.mrf.mxu0 }
 0x510   : > { %v1002_v13 = vmax.f32 %v998_v8, %v2926_v2 }
 0x515   : > { %v2928_v3 = vpop.f32.mrf.mxu0 }
 0x516   : > { %v1005_v16 = vmax.f32 %v1001_v11, %v2928_v3 }
 0x517   : > { %v2930_v5 = vpop.f32.mrf.mxu0 }
 0x518   : > { %v1004_v14 = vmax.f32 %v1000_v9, %v2930_v5 }
 0x51a   : > { %v1008_v19 = vmax.f32 %v1004_v14, %v1005_v16 }
 0x51d   : > { %v2305_v10 = vpop.f32.mrf.mxu0 }
 0x51e   : > { %v1007_v17 = vmax.f32 %v1003_v12, %v2305_v10 }
 0x51f   : > { %v987_v15 = vpop.f32.mrf.mxu0 }
 0x520   : > { %v1006_v18 = vmax.f32 %v1002_v13, %v987_v15 }
 0x522   : > { %v1009_v20 = vmax.f32 %v1006_v18, %v1007_v17 }
 0x524   : > { %v1010_v21 = vmax.f32 %v1008_v19, %v1009_v20 }
 0x526   : > { %v1011_v22 = vrot.slane %v1010_v21, 4 }
 0x528   : > { %v1012_v23 = vmax.f32 %v1010_v21, %v1011_v22 }
 0x52a   : > { %v1013_v24 = vrot.slane %v1012_v23, 2 }
 0x52c   : > { %v1014_v25 = vmax.f32 %v1012_v23, %v1013_v24 }
 0x52e   : > { %v1015_v26 = vrot.slane %v1014_v25, 1 }
 0x530   : > { %v1016_v27 = vmax.f32 %v1014_v25, %v1015_v26 }
 0x532   : > { %v1017_v28 = vsub.f32 %v917_v55, %v1016_v27  ;;  %v1018_v29 = vsub.f32 %v2284_v54, %v1016_v27  ;;  %v1019_v30 = vsub.f32 %v927_v57, %v1016_v27  ;;  %v1020_v31 = vsub.f32 %v2287_v56, %v1016_v27 }
 0x533   : > { %v1021_v33 = vsub.f32 %v937_v59, %v1016_v27  ;;  %v1022_v35 = vsub.f32 %v2290_v58, %v1016_v27  ;;  %v1023_v37 = vsub.f32 %v947_v61, %v1016_v27  ;;  %v1024_v39 = vsub.f32 %v2293_v60, %v1016_v27 }
 0x534   : > { %v1033_v32 = vmul.f32 1.442695, %v1017_v28  ;;  %v1035_v34 = vmul.f32 1.442695, %v1018_v29  ;;  %v1037_v48 = vmul.f32 1.442695, %v1019_v30  ;;  %v1025_v41 = vsub.f32 %v957_v63, %v1016_v27 }
 0x535   : > { %v1039_v36 = vmul.f32 1.442695, %v1020_v31  ;;  %v1041_v38 = vmul.f32 1.442695, %v1021_v33  ;;  %v1043_v40 = vmul.f32 1.442695, %v1022_v35  ;;  %v1032_v43 = vsub.f32 %v2305_v10, %v1016_v27 }
 0x536   : > { %2413 = vpow2.f32 %v1033_v32  ;;  %v1045_v42 = vmul.f32 1.442695, %v1023_v37  ;;  %v1026_v44 = vsub.f32 %v2296_v62, %v1016_v27  ;;  %v1031_v45 = vsub.f32 %v987_v15, %v1016_v27  ;;  %v769_v29 = vld [vmem:[%s768_s14 + $0x8] sm:$0xff] }
 0x537   : > { %2415 = vpow2.f32 %v1035_v34  ;;  %v1047_v46 = vmul.f32 1.442695, %v1024_v39  ;;  %v1027_v47 = vsub.f32 %v2926_v2, %v1016_v27  ;;  %v1049_v49 = vmul.f32 1.442695, %v1025_v41 }
 0x538   : > { %2417 = vpow2.f32 %v1037_v48  ;;  %v1030_v50 = vsub.f32 %v2928_v3, %v1016_v27  ;;  %v1063_v51 = vmul.f32 1.442695, %v1032_v43  ;;  %v1028_v52 = vsub.f32 %v2924_v1, %v1016_v27 }
 0x539   : > { %2419 = vpow2.f32 %v1039_v36  ;;  %v1051_v54 = vmul.f32 1.442695, %v1026_v44  ;;  %v1029_v56 = vsub.f32 %v2930_v5, %v1016_v27  ;;  %v1061_v57 = vmul.f32 1.442695, %v1031_v45 }
 0x53a   : > { %2421 = vpow2.f32 %v1041_v38  ;;  %v1053_v59 = vmul.f32 1.442695, %v1027_v47  ;;  %v1059_v60 = vmul.f32 1.442695, %v1030_v50  ;;  %v1055_v63 = vmul.f32 1.442695, %v1028_v52 }
 0x53b   : > { %2423 = vpow2.f32 %v1043_v40  ;;  %v1057_v1 = vmul.f32 1.442695, %v1029_v56  ;;  %v1162_v47 = vld [vmem:[#allocation4 + $0x8] sm:$0xff] (%p745_p2)  ;;  %v1164_v50 = vld [vmem:[#allocation4 + $0x18] sm:$0xff] (%p745_p2)  ;;  %v1296_v52 = vld [vmem:[%s3349_s0 + $0x30] sm:$0xff] (%p745_p2) }
 0x53c   : > { %2425 = vpow2.f32 %v1045_v42  ;;  %v1293_v56 = vld [vmem:[%s3349_s0 + $0x18] sm:$0xff] (%p745_p2) }
 0x53d   : > { %2427 = vpow2.f32 %v1047_v46  ;;  %v1161_v46 = vld [vmem:[#allocation4] sm:$0xff] (%p745_p2) }
 0x53e   : > { %2429 = vpow2.f32 %v1049_v49  ;;  %v1163_v49 = vld [vmem:[#allocation4 + $0x10] sm:$0xff] (%p745_p2) }
 0x53f   : > { %2431 = vpow2.f32 %v1063_v51  ;;  %v1297_v51 = vld [vmem:[%s3349_s0 + $0x38] sm:$0xff] (%p745_p2) }
 0x540   : > { %2433 = vpow2.f32 %v1051_v54  ;;  %v1295_v54 = vld [vmem:[%s3349_s0 + $0x28] sm:$0xff] (%p745_p2) }
 0x541   : > { %2435 = vpow2.f32 %v1061_v57  ;;  %v1292_v57 = vld [vmem:[%s3349_s0 + $0x10] sm:$0xff] (%p745_p2) }
 0x542   : > { %2437 = vpow2.f32 %v1053_v59  ;;  %v1290_v59 = vld [vmem:[%s3349_s0] sm:$0xff] (%p745_p2) }
 0x543   : > { %v2939_v55 = vpop.eup %2413  ;;  %2439 = vpow2.f32 %v1059_v60  ;;  %v1282_v60 = vld [vmem:[%s3354_s5] sm:$0xff] (%p745_p2) }
 0x544   : > { %v2942_v58 = vpop.eup %2415  ;;  %2441 = vpow2.f32 %v1055_v63  ;;  %v1285_v63 = vld [vmem:[%s3354_s5 + $0x18] sm:$0xff] (%p745_p2) }
 0x545   : > { %v1065_v61 = vadd.f32 %v2942_v58, %v2939_v55  ;;  %v2946_v62 = vpop.eup %2417  ;;  %2443 = vpow2.f32 %v1057_v1  ;;  %v1286_v1 = vld [vmem:[%s3354_s5 + $0x20] sm:$0xff] (%p745_p2) }
 0x546   : > { %v2420_v3 = vpop.eup %2419 }
 0x547   : > { %v1066_v2 = vadd.f32 %v2946_v62, %v1065_v61  ;;  %v2422_v5 = vpop.eup %2421  ;;  %v1283_v61 = vld [vmem:[%s3354_s5 + $0x8] sm:$0xff] (%p745_p2) }
 0x548   : > { %v2424_v7 = vpop.eup %2423 }
 0x549   : > { %v1067_v4 = vadd.f32 %v2420_v3, %v1066_v2  ;;  %v2426_v9 = vpop.eup %2425  ;;  %v1287_v2 = vld [vmem:[%s3354_s5 + $0x28] sm:$0xff] (%p745_p2) }
 0x54a   : > { %v2428_v11 = vpop.eup %2427 }
 0x54b   : > { %v1068_v6 = vadd.f32 %v2422_v5, %v1067_v4  ;;  %v2430_v12 = vpop.eup %2429  ;;  %v1289_v4 = vld [vmem:[%s3354_s5 + $0x38] sm:$0xff] (%p745_p2) }
 0x54c   : > { %v2432_v14 = vpop.eup %2431 }
 0x54d   : > { %v1069_v8 = vadd.f32 %v2424_v7, %v1068_v6  ;;  %v2434_v15 = vpop.eup %2433  ;;  %2307 = vmatpush3.msra.mxu1 %v2432_v14 }
 0x54e   : > { %v2436_v17 = vpop.eup %2435  ;;  %2308 = vmatprep.subr.mxu1 %v2577_v53 }
 0x54f   : > { %v1070_v10 = vadd.f32 %v2426_v9, %v1069_v8  ;;  %v2438_v18 = vpop.eup %2437  ;;  %2309 = vmatpush3.msra.mxu1 %v2436_v17 }
 0x550   : > { %v2440_v20 = vpop.eup %2439  ;;  %2310 = vmatprep.subr.mxu1 %v2577_v53 }
 0x551   : > { %v1071_v13 = vadd.f32 %v2428_v11, %v1070_v10  ;;  %v2442_v21 = vpop.eup %2441  ;;  %2311 = vmatpush3.msra.mxu1 %v2440_v20 }
 0x552   : > { %v2444_v23 = vpop.eup %2443  ;;  %2312 = vmatprep.subr.mxu1 %v2577_v53 }
 0x553   : > { %v1072_v16 = vadd.f32 %v2430_v12, %v1071_v13  ;;  %2313 = vmatpush3.msra.mxu1 %v2444_v23  ;;  %v1179_v13 = vld [vmem:[%s3353_s4 + $0x30] sm:$0xff] (%p745_p2) }
 0x554   : > { %2314 = vmatprep.subr.mxu1 %v2577_v53 }
 0x555   : > { %v1073_v19 = vadd.f32 %v2434_v15, %v1072_v16  ;;  %2315 = vmatpush3.msra.mxu1 %v2442_v21  ;;  %v1177_v16 = vld [vmem:[%s3353_s4 + $0x20] sm:$0xff] (%p745_p2) }
 0x556   : > { %2316 = vmatprep.subr.mxu1 %v2577_v53 }
 0x557   : > { %v1074_v22 = vadd.f32 %v2438_v18, %v1073_v19  ;;  %2317 = vmatpush3.msra.mxu1 %v2438_v18  ;;  %v1176_v18 = vld [vmem:[%s3353_s4 + $0x18] sm:$0xff] (%p745_p2) }
 0x558   : > { %2318 = vmatprep.subr.mxu1 %v2577_v53 }
 0x559   : > { %v1075_v24 = vadd.f32 %v2442_v21, %v1074_v22  ;;  %2319 = vmatpush3.msra.mxu1 %v2434_v15  ;;  %v1174_v22 = vld [vmem:[%s3353_s4 + $0x8] sm:$0xff] (%p745_p2) }
 0x55a   : > { %2320 = vmatprep.subr.mxu1 %v2577_v53 }
 0x55b   : > { %v1076_v25 = vadd.f32 %v2444_v23, %v1075_v24  ;;  %2321 = vmatpush3.msra.mxu1 %v2430_v12  ;;  %v1180_v12 = vld [vmem:[%s3353_s4 + $0x38] sm:$0xff] (%p745_p2)  ;;  %v1173_v24 = vld [vmem:[%s3353_s4] sm:$0xff] (%p745_p2) }
 0x55c   : > { %2322 = vmatprep.subr.mxu1 %v2577_v53 }
 0x55d   : > { %v1077_v26 = vadd.f32 %v2440_v20, %v1076_v25  ;;  %2323 = vmatpush3.msra.mxu1 %v2428_v11  ;;  %v1175_v20 = vld [vmem:[%s3353_s4 + $0x10] sm:$0xff] (%p745_p2) }
 0x55e   : > { %2324 = vmatprep.subr.mxu1 %v2577_v53 }
 0x55f   : > { %v1078_v27 = vadd.f32 %v2436_v17, %v1077_v26  ;;  %2325 = vmatpush3.msra.mxu1 %v2426_v9 }
 0x560   : > { %2326 = vmatprep.subr.mxu1 %v2577_v53 }
 0x561   : > { %v1079_v28 = vadd.f32 %v2432_v14, %v1078_v27  ;;  %2327 = vmatpush3.msra.mxu1 %v2424_v7  ;;  %v1178_v14 = vld [vmem:[%s3353_s4 + $0x28] sm:$0xff] (%p745_p2) }
 0x562   : > { %2328 = vmatprep.subr.mxu1 %v2577_v53 }
 0x563   : > { %2329 = vmatpush3.msra.mxu1 %v2422_v5  ;;  %v1080_v30 = vrot.slane %v1079_v28, 4 }
 0x564   : > { %2330 = vmatprep.subr.mxu1 %v2577_v53 }
 0x565   : > { %2331 = vmatpush3.msra.mxu1 %v2420_v3  ;;  %v1081_v31 = vadd.f32 %v1080_v30, %v1079_v28  ;;  %v1288_v3 = vld [vmem:[%s3354_s5 + $0x30] sm:$0xff] (%p745_p2)  ;;  %v1299_v30 = vld [vmem:[%s3355_s6 + $0x8] sm:$0xff] (%p745_p2) }
 0x566   : > { %2332 = vmatprep.subr.mxu1 %v2577_v53 }
 0x567   : > { %2333 = vmatpush3.msra.mxu1 %v2946_v62  ;;  %v1082_v32 = vrot.slane %v1081_v31, 2  ;;  %v1284_v62 = vld [vmem:[%s3354_s5 + $0x10] sm:$0xff] (%p745_p2) }
 0x568   : > { %2334 = vmatprep.subr.mxu1 %v2577_v53 }
 0x569   : > { %2335 = vmatpush3.msra.mxu1 %v2942_v58  ;;  %v1083_v33 = vadd.f32 %v1082_v32, %v1081_v31  ;;  %v1291_v58 = vld [vmem:[%s3349_s0 + $0x8] sm:$0xff] (%p745_p2)  ;;  %v1300_v31 = vld [vmem:[%s3355_s6 + $0x10] sm:$0xff] (%p745_p2)  ;;  %v1301_v32 = vld [vmem:[%s3355_s6 + $0x18] sm:$0xff] (%p745_p2) }
 0x56a   : > { %2336 = vmatprep.subr.mxu1 %v2577_v53 }
 0x56b   : > { %2337 = vmatpush3.msra.mxu1 %v2939_v55  ;;  %v1084_v34 = vrot.slane %v1083_v33, 1  ;;  %v1294_v55 = vld [vmem:[%s3349_s0 + $0x20] sm:$0xff] (%p745_p2) }
 0x56c   : > { %2339 = vmatmul.mubr.f32.vlgmr.msra.gmra.mxu1 %v769_v29  ;;  %v1298_v29 = vld [vmem:[%s3355_s6] sm:$0xff] (%p745_p2) }
 0x56d   : > { %v1085_v48 = vadd.f32 %v1084_v34, %v1083_v33  ;;  %1394 = vmatprep.mubr.f32.mxu1 (%p745_p2), %v2574_v0  ;;  %v1302_v33 = vld [vmem:[%s3355_s6 + $0x20] sm:$0xff] (%p745_p2)  ;;  %v1303_v34 = vld [vmem:[%s3355_s6 + $0x28] sm:$0xff] (%p745_p2) }
 0x56f   : > { %2445 = vrcp.f32 %v1085_v48  ;;  %v1304_v48 = vld [vmem:[%s3355_s6 + $0x30] sm:$0xff] (%p745_p2) }
 0x57c   : > { %v2446_v35 = vpop.eup %2445 }
 0x62b   :  { %747 = sbr.rel (!%p745_p2) target bundleno = 926 (0x39e), region = 113 }
 0x62c   : > { %v1152_v36 = vpop.f32.mrf.mxu1 }
 0x62d   : > { %v1157_v37 = vmul.f32 %v2446_v35, %v1152_v36  ;;  %v1305_v35 = vld [vmem:[%s3355_s6 + $0x38] sm:$0xff] (%p745_p2) }
 0x62e   : > { %v2340_v38 = vpop.f32.mrf.mxu1 }
 0x62f   : > { %1160 = vst [vmem:[%s1159_s15 + $0x8] sm:$0xff] %v1157_v37 }
 0x636   :  { %v1172_v53 = vld [vmem:[#allocation3 + $0x38] sm:$0xff]  ;;  %v1171_v39 = vld [vmem:[#allocation3 + $0x30] sm:$0xff]  ;;  %v1170_v40 = vld [vmem:[#allocation3 + $0x28] sm:$0xff] }
 0x637   :  { %1217 = vmatprep.subr.mxu0 %v1172_v53  ;;  %v1169_v41 = vld [vmem:[#allocation3 + $0x20] sm:$0xff]  ;;  %v1168_v42 = vld [vmem:[#allocation3 + $0x18] sm:$0xff]  ;;  %v1167_v43 = vld [vmem:[#allocation3 + $0x10] sm:$0xff] }
 0x638   :  { %1218 = vmatpush1.msra.mxu0 %v1171_v39  ;;  %v1166_v44 = vld [vmem:[#allocation3 + $0x8] sm:$0xff]  ;;  %v1165_v45 = vld [vmem:[#allocation3] sm:$0xff] }
 0x639   :  { %1219 = vmatprep.subr.mxu0 %v1170_v40 }
 0x63a   :  { %1220 = vmatpush1.msra.mxu0 %v1169_v41 }
 0x63b   :  { %1221 = vmatprep.subr.mxu0 %v1168_v42 }
 0x63c   :  { %1222 = vmatpush1.msra.mxu0 %v1167_v43 }
 0x63d   :  { %1223 = vmatprep.subr.mxu0 %v1166_v44 }
 0x63e   :  { %1224 = vmatpush1.msra.mxu0 %v1165_v45 }
 0x63f   :  { %2119 = vmatmul.mubr.msk.f32.vlgmr.msra.gmra.mxu0 %vm127_vm0, %v1161_v46  ;;  %1491 = vmatprep.subr.mxu0 %v1297_v51 }
 0x640   :  { %1263 = vmatprep.mubr.f32.mxu0 %v2574_v0  ;;  %1492 = vmatpush1.msra.mxu0 %v1296_v52 }
 0x641   :  { %1493 = vmatprep.subr.mxu0 %v1295_v54 }
 0x642   :  { %1494 = vmatpush1.msra.mxu0 %v1294_v55 }
 0x643   :  { %2120 = vmatmul.mubr.msk.f32.gmra.mxu0 %vm127_vm0, %v1162_v47  ;;  %1495 = vmatprep.subr.mxu0 %v1293_v56 }
 0x644   :  { %1269 = vmatprep.mubr.f32.mxu0 %v2574_v0  ;;  %1496 = vmatpush1.msra.mxu0 %v1292_v57 }
 0x645   :  { %1497 = vmatprep.subr.mxu0 %v1291_v58 }
 0x646   :  { %1498 = vmatpush1.msra.mxu0 %v1290_v59 }
 0x647   :  { %2121 = vmatmul.mubr.msk.f32.gmra.mxu0 %vm127_vm0, %v1163_v49 }
 0x648   :  { %1275 = vmatprep.mubr.f32.mxu0 %v2574_v0 }
 0x64b   :  { %2122 = vmatmul.mubr.msk.f32.gmra.mxu0 %vm127_vm0, %v1164_v50 }
 0x64c   :  { %1531 = vmatprep.mubr.f32.mxu0 %v2574_v0 }
 0x64f   :  { %2131 = vmatmul.mubr.msk.f32.vlgmr.msra.gmra.mxu0 %vm127_vm0, %v1282_v60 }
 0x650   :  { %1537 = vmatprep.mubr.f32.mxu0 %v2574_v0 }
 0x653   :  { %2132 = vmatmul.mubr.msk.f32.gmra.mxu0 %vm127_vm0, %v1283_v61 }
 0x654   :  { %1543 = vmatprep.mubr.f32.mxu0 %v2574_v0 }
 0x657   :  { %2133 = vmatmul.mubr.msk.f32.gmra.mxu0 %vm127_vm0, %v1284_v62  ;;  %v1590_v62 = vld [vmem:[%s3356_s7 + $0x50] sm:$0xff] }
 0x658   :  { %1549 = vmatprep.mubr.f32.mxu0 %v2574_v0 }
 0x65b   :  { %2134 = vmatmul.mubr.msk.f32.gmra.mxu0 %vm127_vm0, %v1285_v63 }
 0x65c   :  { %1555 = vmatprep.mubr.f32.mxu0 %v2574_v0 }
 0x65f   :  { %2135 = vmatmul.mubr.msk.f32.gmra.mxu0 %vm127_vm0, %v1286_v1  ;;  %v1591_v1 = vld [vmem:[%s3356_s7 + $0x58] sm:$0xff] }
 0x660   :  { %1561 = vmatprep.mubr.f32.mxu0 %v2574_v0 }
 0x663   :  { %2136 = vmatmul.mubr.msk.f32.gmra.mxu0 %vm127_vm0, %v1287_v2 }
 0x664   :  { %1567 = vmatprep.mubr.f32.mxu0 %v2574_v0 }
 0x667   :  { %2137 = vmatmul.mubr.msk.f32.gmra.mxu0 %vm127_vm0, %v1288_v3 }
 0x668   :  { %1573 = vmatprep.mubr.f32.mxu0 %v2574_v0 }
 0x66b   :  { %2138 = vmatmul.mubr.msk.f32.gmra.mxu0 %vm127_vm0, %v1289_v4 }
 0x6ff   :  { %v1259_v5 = vpop.f32.mrf.mxu0 }
 0x700   :  { %v1260_v28 = vadd.f32 %v1259_v5, %v1173_v24  ;;  %v1589_v5 = vld [vmem:[%s3356_s7 + $0x48] sm:$0xff] }
 0x701   :  { %v1261_v6 = vpop.f32.mrf.mxu0 }
 0x702   :  { %v1262_v27 = vadd.f32 %v1261_v6, %v1174_v22  ;;  %v1584_v22 = vld [vmem:[%s3356_s7 + $0x20] sm:$0xff] }
 0x703   :  { %v1265_v7 = vpop.f32.mrf.mxu0 }
 0x704   :  { %v1266_v26 = vadd.f32 %v1265_v7, %v1175_v20 }
 0x705   :  { %v1267_v8 = vpop.f32.mrf.mxu0 }
 0x706   :  { %v1268_v25 = vadd.f32 %v1267_v8, %v1176_v18 }
 0x707   :  { %v1271_v9 = vpop.f32.mrf.mxu0 }
 0x708   :  { %v1272_v23 = vadd.f32 %v1271_v9, %v1177_v16  ;;  %v1585_v16 = vld [vmem:[%s3356_s7 + $0x28] sm:$0xff] }
 0x709   :  { %v1273_v10 = vpop.f32.mrf.mxu0 }
 0x70a   :  { %v1274_v21 = vadd.f32 %v1273_v10, %v1178_v14  ;;  %v1588_v10 = vld [vmem:[%s3356_s7 + $0x40] sm:$0xff] }
 0x70b   :  { %v1277_v11 = vpop.f32.mrf.mxu0 }
 0x70c   :  { %v1278_v19 = vadd.f32 %v1277_v11, %v1179_v13 }
 0x70d   :  { %v1279_v15 = vpop.f32.mrf.mxu0 }
 0x70e   :  { %v1280_v17 = vadd.f32 %v1279_v15, %v1180_v12 }
 0x70f   :  { %v1533_v36 = vpop.f32.mrf.mxu0 }
 0x710   :  { %1354 = vmatprep.subr.mxu1 %v1280_v17 }
 0x711   :  { %1355 = vmatpush1.msra.mxu1 %v1278_v19  ;;  %v1535_v37 = vpop.f32.mrf.mxu0 }
 0x712   :  { %1356 = vmatprep.subr.mxu1 %v1274_v21 }
 0x713   :  { %1357 = vmatpush1.msra.mxu1 %v1272_v23  ;;  %v3109_v38 = vpop.f32.mrf.mxu0  ;;  %v1594_v23 = vld [vmem:[%s3356_s7 + $0x70] sm:$0xff] }
 0x714   :  { %1358 = vmatprep.subr.mxu1 %v1268_v25 }
 0x715   :  { %1359 = vmatpush1.msra.mxu1 %v1266_v26  ;;  %v3111_v53 = vpop.f32.mrf.mxu0  ;;  %v1595_v26 = vld [vmem:[%s3356_s7 + $0x78] sm:$0xff] }
 0x716   :  { %1360 = vmatprep.subr.mxu1 %v1262_v27  ;;  %v1581_v27 = vld [vmem:[%s3356_s7 + $0x8] sm:$0xff] }
 0x717   :  { %1361 = vmatpush1.msra.mxu1 %v1260_v28  ;;  %v1545_v39 = vpop.f32.mrf.mxu0 }
 0x718   :  { %2123 = vmatmul.mubr.msk.f32.vlgmr.msra.gmra.mxu1 %vm127_vm0, %v1298_v29 }
 0x719   :  { %1400 = vmatprep.mubr.f32.mxu1 %v2574_v0  ;;  %v1547_v40 = vpop.f32.mrf.mxu0 }
 0x71b   :  { %v3113_v41 = vpop.f32.mrf.mxu0 }
 0x71c   :  { %2124 = vmatmul.mubr.msk.f32.gmra.mxu1 %vm127_vm0, %v1299_v30 }
 0x71d   :  { %1406 = vmatprep.mubr.f32.mxu1 %v2574_v0  ;;  %v1553_v42 = vpop.f32.mrf.mxu0 }
 0x71f   :  { %v1557_v45 = vpop.f32.mrf.mxu0 }
 0x720   :  { %2125 = vmatmul.mubr.msk.f32.gmra.mxu1 %vm127_vm0, %v1300_v31 }
 0x721   :  { %1412 = vmatprep.mubr.f32.mxu1 %v2574_v0  ;;  %v1559_v49 = vpop.f32.mrf.mxu0 }
 0x723   :  { %v1563_v52 = vpop.f32.mrf.mxu0 }
 0x724   :  { %2126 = vmatmul.mubr.msk.f32.gmra.mxu1 %vm127_vm0, %v1301_v32 }
 0x725   :  { %1418 = vmatprep.mubr.f32.mxu1 %v2574_v0  ;;  %v1565_v56 = vpop.f32.mrf.mxu0 }
 0x727   :  { %v1569_v59 = vpop.f32.mrf.mxu0 }
 0x728   :  { %2127 = vmatmul.mubr.msk.f32.gmra.mxu1 %vm127_vm0, %v1302_v33  ;;  %v1593_v33 = vld [vmem:[%s3356_s7 + $0x68] sm:$0xff] }
 0x729   :  { %1424 = vmatprep.mubr.f32.mxu1 %v2574_v0  ;;  %v1571_v2 = vpop.f32.mrf.mxu0 }
 0x72b   :  { %v1575_v12 = vpop.f32.mrf.mxu0 }
 0x72c   :  { %2128 = vmatmul.mubr.msk.f32.gmra.mxu1 %vm127_vm0, %v1303_v34 }
 0x72d   :  { %1430 = vmatprep.mubr.f32.mxu1 %v2574_v0  ;;  %v1577_v24 = vpop.f32.mrf.mxu0 }
 0x730   :  { %2129 = vmatmul.mubr.msk.f32.gmra.mxu1 %vm127_vm0, %v1304_v48 }
 0x731   :  { %1436 = vmatprep.mubr.f32.mxu1 %v2574_v0 }
 0x734   :  { %2130 = vmatmul.mubr.msk.f32.gmra.mxu1 %vm127_vm0, %v1305_v35 }
 0x735   :  { %1982 = vmatprep.mubr.f32.mxu1 %v2574_v0 }
 0x7d8   :  { %v1396_v43 = vpop.f32.mrf.mxu1 }
 0x7d9   :  { %v1534_v32 = vadd.f32 %v1533_v36, %v1396_v43  ;;  %v1592_v36 = vld [vmem:[%s3356_s7 + $0x60] sm:$0xff] }
 0x7da   :  { %v1398_v44 = vpop.f32.mrf.mxu1 }
 0x7db   :  { %v1536_v21 = vadd.f32 %v1535_v37, %v1398_v44 }
 0x7dc   :  { %v3115_v46 = vpop.f32.mrf.mxu1 }
 0x7de   :  { %v3117_v47 = vpop.f32.mrf.mxu1 }
 0x7e0   :  { %v1408_v50 = vpop.f32.mrf.mxu1 }
 0x7e1   :  { %v1546_v18 = vadd.f32 %v1545_v39, %v1408_v50  ;;  %v1580_v39 = vld [vmem:[%s3356_s7] sm:$0xff]  ;;  %v1587_v50 = vld [vmem:[%s3356_s7 + $0x38] sm:$0xff] }
 0x7e2   :  { %v1410_v51 = vpop.f32.mrf.mxu1 }
 0x7e3   :  { %v1548_v13 = vadd.f32 %v1547_v40, %v1410_v51  ;;  %v3163_v34 = vadd.f32 %v1584_v22, %v1546_v18  ;;  %v3172_v40 = vadd.f32 %v1581_v27, %v1536_v21  ;;  %v3186_v51 = vadd.f32 %v1580_v39, %v1534_v32 }
 0x7e4   :  { %v1414_v54 = vpop.f32.mrf.mxu1 }
 0x7e5   :  { %v3156_v28 = vadd.f32 %v1585_v16, %v1548_v13 }
 0x7e6   :  { %v1416_v55 = vpop.f32.mrf.mxu1 }
 0x7e7   :  { %v1554_v43 = vadd.f32 %v1553_v42, %v1416_v55  ;;  %v1586_v42 = vld [vmem:[%s3356_s7 + $0x30] sm:$0xff]  ;;  %v1542_v55 = vadd.f32 %v3111_v53, %v3117_v47 }
 0x7e8   :  { %v1420_v57 = vpop.f32.mrf.mxu1  ;;  %v1582_v53 = vld [vmem:[%s3356_s7 + $0x10] sm:$0xff] }
 0x7e9   :  { %v1558_v7 = vadd.f32 %v1557_v45, %v1420_v57  ;;  %v1618_v45 = vadd.f32 %v3156_v28, %v3163_v34  ;;  %v3196_v57 = vadd.f32 %v1587_v50, %v1554_v43 }
 0x7ea   :  { %v1422_v58 = vpop.f32.mrf.mxu1 }
 0x7eb   :  { %v1560_v3 = vadd.f32 %v1559_v49, %v1422_v58  ;;  %v3142_v19 = vadd.f32 %v1588_v10, %v1558_v7  ;;  %v1612_v58 = vadd.f32 %v3172_v40, %v3186_v51 }
 0x7ec   :  { %v1426_v60 = vpop.f32.mrf.mxu1 }
 0x7ed   :  { %v1564_v61 = vadd.f32 %v1563_v52, %v1426_v60  ;;  %v3135_v14 = vadd.f32 %v1589_v5, %v1560_v3  ;;  %v1552_v52 = vadd.f32 %v3113_v41, %v1414_v54  ;;  %v1583_v41 = vld [vmem:[%s3356_s7 + $0x18] sm:$0xff]  ;;  %v1540_v54 = vadd.f32 %v3109_v38, %v3115_v46 }
 0x7ee   :  { %v1428_v63 = vpop.f32.mrf.mxu1  ;;  %v3212_v47 = vadd.f32 %v1583_v41, %v1542_v55 }
 0x7ef   :  { %v1566_v4 = vadd.f32 %v1565_v56, %v1428_v63  ;;  %v3128_v8 = vadd.f32 %v1590_v62, %v1564_v61  ;;  %v1624_v31 = vadd.f32 %v3135_v14, %v3142_v19  ;;  %v3207_v60 = vadd.f32 %v1586_v42, %v1552_v52 }
 0x7f0   :  { %v1432_v6 = vpop.f32.mrf.mxu1  ;;  %v3216_v62 = vadd.f32 %v1582_v53, %v1540_v54 }
 0x7f1   :  { %v3130_v9 = vadd.f32 %v1591_v1, %v1566_v4  ;;  %v1570_v48 = vadd.f32 %v1569_v59, %v1432_v6  ;;  %v1621_v61 = vadd.f32 %v3196_v57, %v3207_v60 }
 0x7f2   :  { %v1434_v11 = vpop.f32.mrf.mxu1  ;;  %v1615_v63 = vadd.f32 %v3212_v47, %v3216_v62 }
 0x7f3   :  { %v1627_v15 = vadd.f32 %v3130_v9, %v3128_v8  ;;  %v1572_v29 = vadd.f32 %v1571_v2, %v1434_v11  ;;  %v3189_v56 = vadd.f32 %v1592_v36, %v1570_v48 }
 0x7f4   :  { %v1438_v17 = vpop.f32.mrf.mxu1 }
 0x7f5   :  { %v1576_v20 = vadd.f32 %v1575_v12, %v1438_v17  ;;  %1628 = vadd.xlane.f32.xlu1 %v1627_v15  ;;  %v3177_v44 = vadd.f32 %v1593_v33, %v1572_v29 }
 0x7f6   :  { %v1440_v25 = vpop.f32.mrf.mxu1 }
 0x7f7   :  { %v1578_v30 = vadd.f32 %v1577_v24, %v1440_v25  ;;  %v3165_v35 = vadd.f32 %v1594_v23, %v1576_v20  ;;  %v1630_v59 = vadd.f32 %v3177_v44, %v3189_v56 }
 0x7f9   :  { %v3167_v37 = vadd.f32 %v1595_v26, %v1578_v30  ;;  %1625 = vadd.xlane.f32.xlu1 %v1624_v31 }
 0x7fb   :  { %v1633_v49 = vadd.f32 %v3167_v37, %v3165_v35 }
 0x7fd   :  { %1619 = vadd.xlane.f32.xlu1 %v1618_v45  ;;  %1634 = vadd.xlane.f32.xlu0 %v1633_v49 }
 0x801   :  { %1613 = vadd.xlane.f32.xlu1 %v1612_v58  ;;  %1631 = vadd.xlane.f32.xlu0 %v1630_v59 }
 0x805   :  { %1622 = vadd.xlane.f32.xlu0 %v1621_v61 }
 0x809   :  { %1616 = vadd.xlane.f32.xlu0 %v1615_v63 }
 0x87e   :  { %v1629_v38 = vpop.xlane.xlu1 %1628 }
 0x87f   :  { %v3220_v1 = vmul.f32 0.00390625, %v1629_v38 }
 0x881   :  { %v1655_v6 = vsub.f32 %v3128_v8, %v3220_v1  ;;  %v1656_v11 = vsub.f32 %v3130_v9, %v3220_v1 }
 0x882   :  { %v1626_v46 = vpop.xlane.xlu1 %1625 }
 0x883   :  { %v3222_v3 = vmul.f32 0.00390625, %v1626_v46  ;;  %v1671_v20 = vmul.f32 %v1655_v6, %v1655_v6  ;;  %v1672_v24 = vmul.f32 %v1656_v11, %v1656_v11 }
 0x885   :  { %v1653_v17 = vsub.f32 %v3142_v19, %v3222_v3  ;;  %v1654_v21 = vsub.f32 %v3135_v14, %v3222_v3  ;;  %v1692_v43 = vadd.f32 %v1672_v24, %v1671_v20 }
 0x886   :  { %v1635_v2 = vpop.xlane.xlu0 %1634  ;;  %v1620_v4 = vpop.xlane.xlu1 %1619 }
 0x887   :  { %v3224_v5 = vmul.f32 0.00390625, %v1635_v2  ;;  %v3238_v18 = vmul.f32 0.00390625, %v1620_v4  ;;  %v1669_v32 = vmul.f32 %v1653_v17, %v1653_v17  ;;  %v1670_v48 = vmul.f32 %v1654_v21, %v1654_v21 }
 0x889   :  { %v1659_v7 = vsub.f32 %v3165_v35, %v3224_v5  ;;  %v1660_v10 = vsub.f32 %v3167_v37, %v3224_v5  ;;  %v1649_v39 = vsub.f32 %v3163_v34, %v3238_v18  ;;  %v1650_v36 = vsub.f32 %v3156_v28, %v3238_v18 }
 0x88a   :  { %v1632_v12 = vpop.xlane.xlu0 %1631  ;;  %v1614_v22 = vpop.xlane.xlu1 %1613  ;;  %v1689_v59 = vadd.f32 %v1670_v48, %v1669_v32 }
 0x88b   :  { %v3234_v13 = vmul.f32 0.00390625, %v1632_v12  ;;  %v1675_v15 = vmul.f32 %v1659_v7, %v1659_v7  ;;  %v1676_v16 = vmul.f32 %v1660_v10, %v1660_v10  ;;  %v3248_v33 = vmul.f32 0.00390625, %v1614_v22 }
 0x88c   :  { %v1665_v41 = vmul.f32 %v1649_v39, %v1649_v39  ;;  %v1666_v54 = vmul.f32 %v1650_v36, %v1650_v36 }
 0x88d   :  { %v1698_v23 = vadd.f32 %v1676_v16, %v1675_v15  ;;  %v1657_v25 = vsub.f32 %v3189_v56, %v3234_v13  ;;  %v1658_v26 = vsub.f32 %v3177_v44, %v3234_v13  ;;  %v1645_v53 = vsub.f32 %v3186_v51, %v3248_v33 }
 0x88e   :  { %v1623_v27 = vpop.xlane.xlu0 %1622  ;;  %v1646_v46 = vsub.f32 %v3172_v40, %v3248_v33  ;;  %v1683_v6 = vadd.f32 %v1666_v54, %v1665_v41  ;;  %v2579_v15 = vmov 0  }
 0x88f   :  { %v3246_v29 = vmul.f32 0.00390625, %v1623_v27  ;;  %1699 = vadd.xlane.f32.xlu0 %v1698_v23  ;;  %v1673_v30 = vmul.f32 %v1657_v25, %v1657_v25  ;;  %v1674_v31 = vmul.f32 %v1658_v26, %v1658_v26  ;;  %v1661_v10 = vmul.f32 %v1645_v53, %v1645_v53  ;;  %2447 = vset.pattern.permute.xlu1 %v2579_v15 }
 0x890   :  { %v1662_v11 = vmul.f32 %v1646_v46, %v1646_v46  ;;  %2448 = vset.pattern.permute.xlu0 %v2579_v15  ;;  %v1711_v46 = vld [vmem:[%s3357_s8 + $0x10] sm:$0xff]  ;;  %v1709_v15 = vld [vmem:[%s3357_s8] sm:$0xff] }
 0x891   :  { %v1695_v45 = vadd.f32 %v1674_v31, %v1673_v30  ;;  %v1651_v49 = vsub.f32 %v3207_v60, %v3246_v29  ;;  %v1652_v50 = vsub.f32 %v3196_v57, %v3246_v29 }
 0x892   :  { %v1617_v52 = vpop.xlane.xlu0 %1616  ;;  %v1677_v12 = vadd.f32 %v1662_v11, %v1661_v10 }
 0x893   :  { %v3258_v42 = vmul.f32 0.00390625, %v1617_v52  ;;  %1693 = vadd.xlane.f32.xlu0 %v1692_v43  ;;  %1696 = vadd.xlane.f32.xlu1 %v1695_v45  ;;  %v1667_v55 = vmul.f32 %v1651_v49, %v1651_v49  ;;  %v1668_v58 = vmul.f32 %v1652_v50, %v1652_v50  ;;  %v1716_v52 = vld [vmem:[%s3357_s8 + $0x38] sm:$0xff] }
 0x895   :  { %v1686_v61 = vadd.f32 %v1668_v58, %v1667_v55  ;;  %v1647_v63 = vsub.f32 %v3216_v62, %v3258_v42  ;;  %v1648_v38 = vsub.f32 %v3212_v47, %v3258_v42 }
 0x897   :  { %1690 = vadd.xlane.f32.xlu1 %v1689_v59  ;;  %1687 = vadd.xlane.f32.xlu0 %v1686_v61  ;;  %v1663_v2 = vmul.f32 %v1647_v63, %v1647_v63  ;;  %v1664_v4 = vmul.f32 %v1648_v38, %v1648_v38  ;;  %v1712_v61 = vld [vmem:[%s3357_s8 + $0x18] sm:$0xff] }
 0x899   :  { %v1680_v7 = vadd.f32 %v1664_v4, %v1663_v2  ;;  %v1713_v4 = vld [vmem:[%s3357_s8 + $0x20] sm:$0xff] }
 0x89b   :  { %1684 = vadd.xlane.f32.xlu1 %v1683_v6  ;;  %1681 = vadd.xlane.f32.xlu0 %v1680_v7 }
 0x89f   :  { %1678 = vadd.xlane.f32.xlu1 %v1677_v12  ;;  %v1710_v12 = vld [vmem:[%s3357_s8 + $0x8] sm:$0xff] }
 0x918   :  { %v1700_v16 = vpop.xlane.xlu0 %1699 }
 0x919   :  { %v1708_v17 = vmul.f32 0.00390625, %v1700_v16 }
 0x91b   :  { %v1724_v20 = vadd.f32 1e-05, %v1708_v17  ;;  %v1714_v17 = vld [vmem:[%s3357_s8 + $0x28] sm:$0xff] }
 0x91c   :  { %v1697_v21 = vpop.xlane.xlu1 %1696  ;;  %v1694_v22 = vpop.xlane.xlu0 %1693 }
 0x91d   :  { %2449 = vrsqrt.f32 %v1724_v20  ;;  %v1706_v30 = vmul.f32 0.00390625, %v1694_v22  ;;  %v1707_v54 = vmul.f32 0.00390625, %v1697_v21 }
 0x91f   :  { %v1722_v49 = vadd.f32 1e-05, %v1706_v30  ;;  %v1723_v53 = vadd.f32 1e-05, %v1707_v54  ;;  %v1741_v30 = vld [vmem:[%s3358_s9] sm:$0xff] }
 0x920   :  { %v1691_v23 = vpop.xlane.xlu1 %1690  ;;  %v1688_v24 = vpop.xlane.xlu0 %1687 }
 0x921   :  { %v1705_v25 = vmul.f32 0.00390625, %v1691_v23  ;;  %v1704_v26 = vmul.f32 0.00390625, %v1688_v24 }
 0x923   :  { %v1720_v27 = vadd.f32 1e-05, %v1704_v26  ;;  %v1721_v31 = vadd.f32 1e-05, %v1705_v25  ;;  %v1745_v25 = vld [vmem:[%s3358_s9 + $0x20] sm:$0xff] }
 0x924   :  { %v1685_v32 = vpop.xlane.xlu1 %1684  ;;  %v1682_v48 = vpop.xlane.xlu0 %1681 }
 0x925   :  { %v1703_v39 = vmul.f32 0.00390625, %v1685_v32  ;;  %v1702_v36 = vmul.f32 0.00390625, %v1682_v48  ;;  %2451 = vrsqrt.f32 %v1720_v27  ;;  %v1715_v32 = vld [vmem:[%s3357_s8 + $0x30] sm:$0xff] }
 0x926   :  { %2453 = vrsqrt.f32 %v1721_v31 }
 0x927   :  { %v1719_v43 = vadd.f32 1e-05, %v1703_v39  ;;  %v1718_v45 = vadd.f32 1e-05, %v1702_v36 }
 0x928   :  { %v1679_v50 = vpop.xlane.xlu1 %1678 }
 0x929   :  { %2455 = vrsqrt.f32 %v1719_v43  ;;  %v1701_v55 = vmul.f32 0.00390625, %v1679_v50 }
 0x92a   :  { %v2450_v58 = vpop.eup %2449  ;;  %2457 = vrsqrt.f32 %v1718_v45  ;;  %v1747_v45 = vld [vmem:[%s3358_s9 + $0x30] sm:$0xff] }
 0x92b   :  { %v1717_v59 = vadd.f32 1e-05, %v1701_v55  ;;  %v1740_v41 = vmul.f32 %v2450_v58, %v1716_v52  ;;  %2459 = vrsqrt.f32 %v1722_v49 }
 0x92d   :  { %2461 = vrsqrt.f32 %v1717_v59  ;;  %1802 = vperm.xlu0 %2448, %v1740_v41   ;;  %v1756_v50 = vmul.f32 %v1740_v41, %v3224_v5  ;;  %v1743_v5 = vld [vmem:[%s3358_s9 + $0x10] sm:$0xff] }
 0x92e   :  { %2463 = vrsqrt.f32 %v1723_v53 }
 0x932   :  { %v2452_v63 = vpop.eup %2451 }
 0x933   :  { %v1736_v38 = vmul.f32 %v2452_v63, %v1712_v61  ;;  %v2454_v2 = vpop.eup %2453 }
 0x934   :  { %v1737_v11 = vmul.f32 %v2454_v2, %v1713_v4 }
 0x935   :  { %1782 = vperm.xlu1 %2447, %v1736_v38   ;;  %v1752_v55 = vmul.f32 %v1736_v38, %v3246_v29  ;;  %v1742_v29 = vld [vmem:[%s3358_s9 + $0x8] sm:$0xff] }
 0x936   :  { %v2456_v6 = vpop.eup %2455  ;;  %v1753_v24 = vmul.f32 %v1737_v11, %v3222_v3 }
 0x937   :  { %v1735_v7 = vmul.f32 %v2456_v6, %v1711_v46  ;;  %v2458_v10 = vpop.eup %2457 }
 0x938   :  { %v2460_v16 = vpop.eup %2459  ;;  %v1734_v21 = vmul.f32 %v2458_v10, %v1710_v12  ;;  %v1761_v27 = vsub.f32 %v1745_v25, %v1753_v24 }
 0x939   :  { %1777 = vperm.xlu0 %2448, %v1735_v7   ;;  %1787 = vperm.xlu1 %2447, %v1737_v11   ;;  %v1738_v23 = vmul.f32 %v2460_v16, %v1714_v17  ;;  %v1751_v59 = vmul.f32 %v1735_v7, %v3238_v18 }
 0x93a   :  { %v2462_v20 = vpop.eup %2461  ;;  %v1750_v54 = vmul.f32 %v1734_v21, %v3258_v42 }
 0x93b   :  { %v1733_v22 = vmul.f32 %v2462_v20, %v1709_v15  ;;  %v2464_v31 = vpop.eup %2463  ;;  %v1754_v39 = vmul.f32 %v1738_v23, %v3220_v1  ;;  %v1748_v1 = vld [vmem:[%s3358_s9 + $0x38] sm:$0xff]  ;;  %v1759_v41 = vsub.f32 %v1743_v5, %v1751_v59 }
 0x93c   :  { %v1739_v48 = vmul.f32 %v2464_v31, %v1715_v32  ;;  %v1764_v52 = vsub.f32 %v1748_v1, %v1756_v50  ;;  %v1758_v53 = vsub.f32 %v1742_v29, %v1750_v54 }
 0x93d   :  { %1772 = vperm.xlu0 %2448, %v1734_v21   ;;  %1792 = vperm.xlu1 %2447, %v1738_v23   ;;  %v1749_v26 = vmul.f32 %v1733_v22, %v3248_v33  ;;  %v1746_v33 = vld [vmem:[%s3358_s9 + $0x28] sm:$0xff] }
 0x93e   :  { %v1762_v36 = vsub.f32 %v1746_v33, %v1754_v39  ;;  %v1755_v43 = vmul.f32 %v1739_v48, %v3234_v13  ;;  %v1744_v13 = vld [vmem:[%s3358_s9 + $0x18] sm:$0xff]  ;;  %s2580_s9 = smov [#allocation10]  }
 0x93f   :  { %v1757_v3 = vsub.f32 %v1741_v30, %v1749_v26  ;;  %v1760_v58 = vsub.f32 %v1744_v13, %v1752_v55  ;;  %s2020_s21 = sshll.u32 %s2580_s9, 4  ;;  %s2021_s21 = int_to_ptr.vmem [resolvable:$true] %s2020_s21 }
 0x940   :  { %v1763_v49 = vsub.f32 %v1747_v45, %v1755_v43  ;;  %s2525_s4 = scalar_lea.vmem %s2021_s21, 1024  ;;  %p2530_p4 = scmp.lt.s32.totalorder %s2021_s21, %s2021_s21 }
 0x941   :  { %1767 = vperm.xlu0 %2448, %v1733_v22   ;;  %1843 = vperm.xlu1 %2447, %v1761_v27   ;;  %p2526_p3 = scmp.ne.s32.totalorder %s2021_s21, %s2525_s4  ;;  %p2531_p5 = scmp.lt.s32.totalorder %s2525_s4, %s2525_s4 }
 0x943   :  { %p2532_p6 = por %p2531_p5, %p2530_p4 }
 0x945   :  { %1823 = vperm.xlu0 %2448, %v1757_v3   ;;  %1797 = vperm.xlu1 %2447, %v1739_v48   ;;  %p2533_p7 = pnand %p2532_p6, %p2526_p3 }
 0x949   :  { %1848 = vperm.xlu1 %2447, %v1762_v36  }
 0x94d   :  { %1853 = vperm.xlu1 %2447, %v1763_v49  }
 0x951   :  { %1858 = vperm.xlu1 %2447, %v1764_v52  }
 0x955   :  { %1838 = vperm.xlu1 %2447, %v1760_v58  }
 0x959   :  { %1833 = vperm.xlu1 %2447, %v1759_v41  }
 0x95d   :  { %1828 = vperm.xlu1 %2447, %v1758_v53  }
 0x9a8   :  { %v1803_v18 = vpop.permute.xlu0 %1802 }
 0x9a9   :  { %v1819_v11 = vmul.f32 %v1803_v18, %v3165_v35  ;;  %v1820_v42 = vmul.f32 %v1803_v18, %v3167_v37  ;;  %v1896_v18 = vld [vmem:[#allocation7 + $0x18] sm:$0xff] }
 0x9b0   :  { %v1783_v61 = vpop.permute.xlu1 %1782 }
 0x9b1   :  { %v1811_v3 = vmul.f32 %v1783_v61, %v3207_v60 }
 0x9b4   :  { %v1788_v63 = vpop.permute.xlu1 %1787  ;;  %v1778_v4 = vpop.permute.xlu0 %1777 }
 0x9b5   :  { %v1814_v25 = vmul.f32 %v1788_v63, %v3135_v14  ;;  %v1813_v37 = vmul.f32 %v1788_v63, %v3142_v19  ;;  %v1810_v14 = vmul.f32 %v1778_v4, %v3156_v28  ;;  %v1809_v19 = vmul.f32 %v1778_v4, %v3163_v34 }
 0x9b8   :  { %v1793_v38 = vpop.permute.xlu1 %1792  ;;  %v1773_v10 = vpop.permute.xlu0 %1772 }
 0x9b9   :  { %v1816_v17 = vmul.f32 %v1793_v38, %v3130_v9  ;;  %v1815_v23 = vmul.f32 %v1793_v38, %v3128_v8  ;;  %v1807_v52 = vmul.f32 %v1773_v10, %v3216_v62  ;;  %v1808_v28 = vmul.f32 %v1773_v10, %v3212_v47  ;;  %v1894_v38 = vld [vmem:[#allocation7 + $0x8] sm:$0xff] }
 0x9bc   :  { %v1844_v46 = vpop.permute.xlu1 %1843  ;;  %v1768_v30 = vpop.permute.xlu0 %1767 }
 0x9bd   :  { %v1870_v32 = vadd.f32 %v1844_v46, %v1814_v25  ;;  %v1869_v48 = vadd.f32 %v1844_v46, %v1813_v37  ;;  %v1806_v55 = vmul.f32 %v1768_v30, %v3172_v40  ;;  %v1805_v34 = vmul.f32 %v1768_v30, %v3186_v51  ;;  %v1893_v51 = vld [vmem:[#allocation7] sm:$0xff]  ;;  %v1895_v46 = vld [vmem:[#allocation7 + $0x10] sm:$0xff] }
 0x9be   :  { %v1903_v25 = vld [vmem:[#allocation9 + $0x30] sm:$0xff] }
 0x9bf   :  { %v1885_v50 = vmax.f32 %v1869_v48, 0.0 }
 0x9c0   :  { %v1798_v2 = vpop.permute.xlu1 %1797  ;;  %v1824_v1 = vpop.permute.xlu0 %1823 }
 0x9c1   :  { %v1818_v12 = vmul.f32 %v1798_v2, %v3177_v44  ;;  %v1817_v15 = vmul.f32 %v1798_v2, %v3189_v56  ;;  %v1812_v56 = vmul.f32 %v1783_v61, %v3196_v57  ;;  %v1886_v57 = vmax.f32 %v1870_v32, 0.0  ;;  %v1897_v2 = vld [vmem:[#allocation9] sm:$0xff] }
 0x9c2   :  { %v1862_v5 = vadd.f32 %v1824_v1, %v1806_v55  ;;  %v1861_v53 = vadd.f32 %v1824_v1, %v1805_v34 }
 0x9c4   :  { %v1849_v6 = vpop.permute.xlu1 %1848  ;;  %v1878_v40 = vmax.f32 %v1862_v5, 0.0  ;;  %v1877_v47 = vmax.f32 %v1861_v53, 0.0 }
 0x9c5   :  { %v1872_v26 = vadd.f32 %v1849_v6, %v1816_v17  ;;  %v1871_v44 = vadd.f32 %v1849_v6, %v1815_v23  ;;  %v1898_v6 = vld [vmem:[#allocation9 + $0x8] sm:$0xff] }
 0x9c7   :  { %v1888_v39 = vmax.f32 %v1872_v26, 0.0  ;;  %v1887_v36 = vmax.f32 %v1871_v44, 0.0 }
 0x9c8   :  { %v1854_v7 = vpop.permute.xlu1 %1853 }
 0x9c9   :  { %v1874_v20 = vadd.f32 %v1854_v7, %v1818_v12  ;;  %v1873_v24 = vadd.f32 %v1854_v7, %v1817_v15  ;;  %v1900_v15 = vld [vmem:[#allocation9 + $0x18] sm:$0xff] }
 0x9cb   :  { %v1890_v9 = vmax.f32 %v1874_v20, 0.0  ;;  %v1889_v8 = vmax.f32 %v1873_v24, 0.0  ;;  %v1901_v20 = vld [vmem:[#allocation9 + $0x20] sm:$0xff] }
 0x9cc   :  { %v1859_v16 = vpop.permute.xlu1 %1858 }
 0x9cd   :  { %v1875_v21 = vadd.f32 %v1859_v16, %v1819_v11  ;;  %v1876_v22 = vadd.f32 %v1859_v16, %v1820_v42  ;;  %v1899_v11 = vld [vmem:[#allocation9 + $0x10] sm:$0xff] }
 0x9cf   :  { %v1891_v27 = vmax.f32 %v1875_v21, 0.0  ;;  %v1892_v35 = vmax.f32 %v1876_v22, 0.0 }
 0x9d0   :  { %v1839_v31 = vpop.permute.xlu1 %1838 }
 0x9d1   :  { %1934 = vmatprep.subr.mxu1 %v1892_v35  ;;  %v1868_v33 = vadd.f32 %v1839_v31, %v1812_v56  ;;  %v1867_v43 = vadd.f32 %v1839_v31, %v1811_v3  ;;  %v1904_v35 = vld [vmem:[#allocation9 + $0x38] sm:$0xff] }
 0x9d2   :  { %1935 = vmatpush1.msra.mxu1 %v1891_v27 }
 0x9d3   :  { %1936 = vmatprep.subr.mxu1 %v1890_v9  ;;  %v1884_v13 = vmax.f32 %v1868_v33, 0.0  ;;  %v1883_v58 = vmax.f32 %v1867_v43, 0.0 }
 0x9d4   :  { %v1834_v45 = vpop.permute.xlu1 %1833  ;;  %1937 = vmatpush1.msra.mxu1 %v1889_v8 }
 0x9d5   :  { %v1866_v49 = vadd.f32 %v1834_v45, %v1810_v14  ;;  %1938 = vmatprep.subr.mxu1 %v1888_v39  ;;  %v1865_v60 = vadd.f32 %v1834_v45, %v1809_v19 }
 0x9d6   :  { %1939 = vmatpush1.msra.mxu1 %v1887_v36 }
 0x9d7   :  { %1940 = vmatprep.subr.mxu1 %v1886_v57  ;;  %v1882_v41 = vmax.f32 %v1866_v49, 0.0  ;;  %v1881_v61 = vmax.f32 %v1865_v60, 0.0 }
 0x9d8   :  { %v1829_v59 = vpop.permute.xlu1 %1828  ;;  %1941 = vmatpush1.msra.mxu1 %v1885_v50 }
 0x9d9   :  { %v1863_v54 = vadd.f32 %v1829_v59, %v1807_v52  ;;  %v1864_v29 = vadd.f32 %v1829_v59, %v1808_v28  ;;  %1942 = vmatprep.subr.mxu1 %v1884_v13 }
 0x9da   :  { %1943 = vmatpush1.msra.mxu1 %v1883_v58 }
 0x9db   :  { %v1879_v62 = vmax.f32 %v1863_v54, 0.0  ;;  %v1880_v63 = vmax.f32 %v1864_v29, 0.0  ;;  %1944 = vmatprep.subr.mxu1 %v1882_v41 }
 0x9dc   :  { %1945 = vmatpush1.msra.mxu1 %v1881_v61 }
 0x9dd   :  { %1946 = vmatprep.subr.mxu1 %v1880_v63 }
 0x9de   :  { %1947 = vmatpush1.msra.mxu1 %v1879_v62 }
 0x9df   :  { %1948 = vmatprep.subr.mxu1 %v1878_v40 }
 0x9e0   :  { %1949 = vmatpush1.msra.mxu1 %v1877_v47 }
 0x9e1   :  { %2139 = vmatmul.mubr.msk.f32.vlgmr.msra.gmra.mxu1 %vm1905_vm4, %v1893_v51 }
 0x9e2   :  { %1988 = vmatprep.mubr.f32.mxu1 %v2574_v0 }
 0x9e5   :  { %2140 = vmatmul.mubr.msk.f32.gmra.mxu1 %vm1905_vm4, %v1894_v38 }
 0x9e6   :  { %1994 = vmatprep.mubr.f32.mxu1 %v2574_v0 }
 0x9e9   :  { %2141 = vmatmul.mubr.msk.f32.gmra.mxu1 %vm1905_vm4, %v1895_v46 }
 0x9ea   :  { %2000 = vmatprep.mubr.f32.mxu1 %v2574_v0  ;;  %v1902_v0 = vld [vmem:[#allocation9 + $0x28] sm:$0xff] }
 0x9ed   :  { %2142 = vmatmul.mubr.msk.f32.gmra.mxu1 %vm1905_vm4, %v1896_v18 }
 0xaa1   :  { %v1984_v4 = vpop.f32.mrf.mxu1 }
 0xaa2   :  { %v1985_v7 = vadd.f32 %v1984_v4, %v1897_v2 }
 0xaa3   :  { %v1986_v10 = vpop.f32.mrf.mxu1 }
 0xaa4   :  { %2007 = vst [vmem:[#allocation10] sm:$0xff] %v1985_v7  ;;  %v1987_v42 = vadd.f32 %v1986_v10, %v1898_v6 }
 0xaa5   :  { %v1990_v12 = vpop.f32.mrf.mxu1 }
 0xaa6   :  { %2008 = vst [vmem:[#allocation10 + $0x8] sm:$0xff] %v1987_v42  ;;  %v1991_v16 = vadd.f32 %v1990_v12, %v1899_v11 }
 0xaa7   :  { %v1992_v17 = vpop.f32.mrf.mxu1 }
 0xaa8   :  { %2009 = vst [vmem:[#allocation10 + $0x10] sm:$0xff] %v1991_v16  ;;  %v1993_v21 = vadd.f32 %v1992_v17, %v1900_v15 }
 0xaa9   :  { %v1996_v22 = vpop.f32.mrf.mxu1 }
 0xaaa   :  { %2010 = vst [vmem:[#allocation10 + $0x18] sm:$0xff] %v1993_v21  ;;  %v1997_v23 = vadd.f32 %v1996_v22, %v1901_v20 }
 0xaab   :  { %v1998_v24 = vpop.f32.mrf.mxu1 }
 0xaac   :  { %2011 = vst [vmem:[#allocation10 + $0x20] sm:$0xff] %v1997_v23  ;;  %v1999_v26 = vadd.f32 %v1998_v24, %v1902_v0 }
 0xaad   :  { %v2002_v27 = vpop.f32.mrf.mxu1 }
 0xaae   :  { %2012 = vst [vmem:[#allocation10 + $0x28] sm:$0xff] %v1999_v26  ;;  %v2003_v37 = vadd.f32 %v2002_v27, %v1903_v25 }
 0xaaf   :  { %v2004_v30 = vpop.f32.mrf.mxu1 }
 0xab0   :  { %2013 = vst [vmem:[#allocation10 + $0x30] sm:$0xff] %v2003_v37  ;;  %v2005_v44 = vadd.f32 %v2004_v30, %v1904_v35 }
 0xab2   :  { %2014 = vst [vmem:[#allocation10 + $0x38] sm:$0xff] %v2005_v44 }
 0xab3   :  { %2536 = shalt.err (!%p2533_p7)
}
 0xab4   :  { %2026 = dma.vmem_to_hbm [thread:$0]  %s2021_s21, 1024, %s3361_s12, [#allocation6], %s2572_s10, %s2572_s10, %s2573_s18  }
 0xab5   :  { %2557 = dma.done.wait [#allocation6], 1024  }
 0xab6   :  { %2558 = vsyncadd [#allocation6], 4294966272 }
 0xab7   :  { %2030 = vsyncpa [#allocation5], 1 }
 0xab8   :  { %2031 = vsyncpa [#allocation8], 1 }
 0xab9   :  { %2032 = vsyncpa [#allocation6], 1 }

</bundles_post_ra>
